<compile_context>
chip_gen: v7x
topology: tpu7x:2x2x1
jax: 0.10.0
libtpu: 0.0.40
codegen_flags: <defaults>
</compile_context>

<pallas_src>
import functools

import jax
import jax.numpy as jnp
from jax.experimental import pallas as pl
from jax.experimental.pallas import tpu as pltpu


def _duq_kernel(feats_ref, wT_ref, e_ref, sel_ref, z_ref, y_ref, *, scale):
    feats = feats_ref[...]                                                  # (TN, L)

    # z_flat[i, m*C + n] = sum_j feats[i, j] * w[m, n, j]   -- MXU matmul, lane-dense output
    z = jnp.dot(feats, wT_ref[...], preferred_element_type=jnp.float32)    # (TN, E*C)
    z_ref[...] = z

    # diff^2 against the class centroids (broadcast over rows)
    d = z - e_ref[...]                                                     # (TN, E*C)
    d2 = d * d

    # per-class sum over emb_dim via a block-selector matmul: (TN, E*C) @ (E*C, C) -> (TN, C)
    ssq = jnp.dot(d2, sel_ref[...], preferred_element_type=jnp.float32)    # (TN, C)

    # y = exp( -mean_m(diff^2) / (2 sigma^2) );  scale = -1 / (E * 2 * sigma^2)
    y_ref[...] = jnp.exp(ssq * scale)


def duq_forward(point_cloud, feats, w, m_buf, n_buf, *, sigma=0.3, tile_n=128):
    """JAX/Pallas equivalent of DUQParticleClassifier.forward (post-encoder math)."""
    feats = feats.astype(jnp.float32)
    n_pts, latent = feats.shape
    emb_dim, num_classes, latent2 = w.shape
    assert latent2 == latent
    ec = emb_dim * num_classes

    if n_pts < tile_n:
        tile_n = n_pts                                   # full-extent block is always legal

    # parameter-side prep (one-time / tiny, fused by XLA)
    wT = jnp.transpose(w.reshape(ec, latent).astype(jnp.float32))           # (L, E*C)
    centroids = m_buf.astype(jnp.float32) / n_buf.astype(jnp.float32)[None, :]  # (E, C)
    e_flat = centroids.reshape(1, ec)                                       # (1, E*C)
    sel = jnp.tile(jnp.eye(num_classes, dtype=jnp.float32), (emb_dim, 1))   # (E*C, C)
    scale = -1.0 / (float(emb_dim) * 2.0 * float(sigma) ** 2)

    grid = (pl.cdiv(n_pts, tile_n),)

    z_flat, y_pred = pl.pallas_call(
        functools.partial(_duq_kernel, scale=scale),
        out_shape=(
            jax.ShapeDtypeStruct((n_pts, ec), jnp.float32),          # z (flattened)
            jax.ShapeDtypeStruct((n_pts, num_classes), jnp.float32),  # y_pred
        ),
        grid_spec=pltpu.PrefetchScalarGridSpec(
            num_scalar_prefetch=0,
            grid=grid,
            in_specs=[
                pl.BlockSpec((tile_n, latent), lambda i: (i, 0)),     # feats: tiled over rows
                pl.BlockSpec((latent, ec), lambda i: (0, 0)),         # w^T: resident across grid
                pl.BlockSpec((1, ec), lambda i: (0, 0)),              # centroids (flat)
                pl.BlockSpec((ec, num_classes), lambda i: (0, 0)),    # class-selector matrix
            ],
            out_specs=(
                pl.BlockSpec((tile_n, ec), lambda i: (i, 0)),         # z: lane-dense (E*C lanes)
                pl.BlockSpec((tile_n, num_classes), lambda i: (i, 0)),
            ),
        ),
        compiler_params=pltpu.CompilerParams(
            dimension_semantics=("parallel",),   # rows independent -> v7x megacore split
        ),
    )(feats, wT, e_flat, sel)

    z = z_flat.reshape(n_pts, emb_dim, num_classes)

    res = {
        "score": [y_pred],
        "embedding": [z],
        "input": [point_cloud],
        # kept on device (original does .detach().cpu().numpy(): a blocking host sync we avoid)
        "centroids": [centroids],
    }
    return res


if __name__ == "__main__":
    key = jax.random.PRNGKey(0)
    N_PTS, LATENT, EMB_DIM, NUM_CLASSES = 256, 256, 64, 5
    SIGMA = 0.3

    k1, k2, k3, k4 = jax.random.split(key, 4)
    # TODO(synk): encoder (sparse residual CNN) not implemented; features generated directly.
    point_cloud = jax.random.normal(k1, (N_PTS, 4), dtype=jnp.float32)        # stand-in coords+feat
    feats = jax.random.normal(k2, (N_PTS, LATENT), dtype=jnp.float32)         # encoder output
    w = 0.05 * jax.random.normal(k3, (EMB_DIM, NUM_CLASSES, LATENT), dtype=jnp.float32)
    n_buf = jnp.ones((NUM_CLASSES,), dtype=jnp.float32) * 20.0                # registered buffer N
    m_buf = (0.05 * jax.random.normal(k4, (EMB_DIM, NUM_CLASSES), dtype=jnp.float32)) * 20.0

    fwd = jax.jit(functools.partial(duq_forward, sigma=SIGMA))
    res = fwd(point_cloud, feats, w, m_buf, n_buf)
    y_pred = res["score"][0]
    z = res["embedding"][0]
    jax.block_until_ready(y_pred)
    jax.block_until_ready(z)

    # pure-JAX reference (matches the PyTorch forward math)
    z_ref = jnp.einsum("ij,mnj->imn", feats, w, precision=jax.lax.Precision.HIGHEST)
    e_ref = m_buf / n_buf[None, :]
    diff = z_ref - e_ref[None]
    y_ref = jnp.exp(jnp.mean(-diff * diff, axis=1) / (2.0 * SIGMA * SIGMA))

    z_err = float(jnp.max(jnp.abs(z - z_ref)))
    y_err = float(jnp.max(jnp.abs(y_pred - y_ref)))
    assert z_err < 1e-2, ("embedding mismatch", z_err)
    assert y_err < 1e-3, ("score mismatch", y_err)

    print("KERNEL_OK")
</pallas_src>

<mosaic_0001>
module attributes {stable_mosaic.version = 11 : i64} {
  func.func @_duq_kernel(%arg0: i32, %arg1: memref<128x256xf32, #tpu.memory_space<vmem>>, %arg2: memref<256x320xf32, #tpu.memory_space<vmem>>, %arg3: memref<1x320xf32, #tpu.memory_space<vmem>>, %arg4: memref<320x5xf32, #tpu.memory_space<vmem>>, %arg5: memref<128x320xf32, #tpu.memory_space<vmem>>, %arg6: memref<128x5xf32, #tpu.memory_space<vmem>>) attributes {dimension_semantics = [#tpu.dimension_semantics<parallel>], iteration_bounds = array<i64: 2>, scalar_prefetch = 0 : i64, scratch_operands = 0 : i64, tpu.core_type = #tpu.core_type<tc>, window_params = [{transform_indices = @transform_0, window_bounds = array<i64: 128, 256>}, {pipeline_mode = #tpu.pipeline_mode<synchronous>, transform_indices = @transform_1, window_bounds = array<i64: 256, 320>}, {pipeline_mode = #tpu.pipeline_mode<synchronous>, transform_indices = @transform_2, window_bounds = array<i64: 1, 320>}, {pipeline_mode = #tpu.pipeline_mode<synchronous>, transform_indices = @transform_3, window_bounds = array<i64: 320, 5>}, {transform_indices = @transform_4, window_bounds = array<i64: 128, 320>}, {transform_indices = @transform_5, window_bounds = array<i64: 128, 5>}]} {
    %c0 = arith.constant 0 : index
    %c0_0 = arith.constant 0 : index
    %0 = vector.load %arg1[%c0, %c0_0] : memref<128x256xf32, #tpu.memory_space<vmem>>, vector<128x256xf32>
    %c0_1 = arith.constant 0 : index
    %c0_2 = arith.constant 0 : index
    %1 = vector.load %arg2[%c0_1, %c0_2] : memref<256x320xf32, #tpu.memory_space<vmem>>, vector<256x320xf32>
    %cst = arith.constant dense<0.000000e+00> : vector<128x320xf32>
    %2 = tpu.matmul %0, %1, %cst {dimension_numbers = #tpu.dot_dimension_numbers<[1], [0], [0], [1], [0, 0, 1, 1], [], []>} : vector<128x256xf32>, vector<256x320xf32>, vector<128x320xf32> -> vector<128x320xf32>
    %c0_3 = arith.constant 0 : index
    %c0_4 = arith.constant 0 : index
    %3 = vector.load %arg5[%c0_3, %c0_4] : memref<128x320xf32, #tpu.memory_space<vmem>>, vector<128x320xf32>
    tpu.vector_store %arg5[%c0_3, %c0_4], %2 {strides = array<i32>} : memref<128x320xf32, #tpu.memory_space<vmem>>, vector<128x320xf32>,
    %c0_5 = arith.constant 0 : index
    %c0_6 = arith.constant 0 : index
    %4 = vector.load %arg3[%c0_5, %c0_6] : memref<1x320xf32, #tpu.memory_space<vmem>>, vector<1x320xf32>
    %5 = vector.broadcast %4 : vector<1x320xf32> to vector<128x320xf32>
    %6 = arith.subf %2, %5 : vector<128x320xf32>
    %7 = arith.mulf %6, %6 : vector<128x320xf32>
    %c0_7 = arith.constant 0 : index
    %c0_8 = arith.constant 0 : index
    %8 = vector.load %arg4[%c0_7, %c0_8] : memref<320x5xf32, #tpu.memory_space<vmem>>, vector<320x5xf32>
    %cst_9 = arith.constant dense<0.000000e+00> : vector<128x5xf32>
    %9 = tpu.matmul %7, %8, %cst_9 {dimension_numbers = #tpu.dot_dimension_numbers<[1], [0], [0], [1], [0, 0, 1, 1], [], []>} : vector<128x320xf32>, vector<320x5xf32>, vector<128x5xf32> -> vector<128x5xf32>
    %cst_10 = arith.constant -0.0868055522 : f32
    %10 = vector.broadcast %cst_10 : f32 to vector<128x5xf32>
    %11 = arith.mulf %9, %10 : vector<128x5xf32>
    %12 = math.exp %11 : vector<128x5xf32>
    %c0_11 = arith.constant 0 : index
    %c0_12 = arith.constant 0 : index
    %13 = vector.load %arg6[%c0_11, %c0_12] : memref<128x5xf32, #tpu.memory_space<vmem>>, vector<128x5xf32>
    tpu.vector_store %arg6[%c0_11, %c0_12], %12 {strides = array<i32>} : memref<128x5xf32, #tpu.memory_space<vmem>>, vector<128x5xf32>,
    return
  }
  func.func @transform_0(%arg0: i32) -> (i32, i32) {
    %c0_i32 = arith.constant 0 : i32
    %c0_i32_0 = arith.constant 0 : i32
    return %arg0, %c0_i32 : i32, i32
  }
  func.func @transform_1(%arg0: i32) -> (i32, i32) {
    %c0_i32 = arith.constant 0 : i32
    %c0_i32_0 = arith.constant 0 : i32
    %c0_i32_1 = arith.constant 0 : i32
    return %c0_i32, %c0_i32_0 : i32, i32
  }
  func.func @transform_2(%arg0: i32) -> (i32, i32) {
    %c0_i32 = arith.constant 0 : i32
    %c0_i32_0 = arith.constant 0 : i32
    %c0_i32_1 = arith.constant 0 : i32
    return %c0_i32, %c0_i32_0 : i32, i32
  }
  func.func @transform_3(%arg0: i32) -> (i32, i32) {
    %c0_i32 = arith.constant 0 : i32
    %c0_i32_0 = arith.constant 0 : i32
    %c0_i32_1 = arith.constant 0 : i32
    return %c0_i32, %c0_i32_0 : i32, i32
  }
  func.func @transform_4(%arg0: i32) -> (i32, i32) {
    %c0_i32 = arith.constant 0 : i32
    %c0_i32_0 = arith.constant 0 : i32
    return %arg0, %c0_i32 : i32, i32
  }
  func.func @transform_5(%arg0: i32) -> (i32, i32) {
    %c0_i32 = arith.constant 0 : i32
    %c0_i32_0 = arith.constant 0 : i32
    return %arg0, %c0_i32 : i32, i32
  }
}

</mosaic_0001>

<bundles_post_ra>
// kernel: tile.9
= control target key start
LH: loop header
LB: loop body
LE: loop exit
PB: predicated region body
PF: predicated region fallthrough
CT: control target
= control target key end

     0   :  { %vm5_vm0 = vcmask 1041409   ;;  %vm9_vm1 = vcmask 1042434   ;;  %vm13_vm2 = vcmask 1043459   ;;  %vm17_vm3 = vcmask 1044484   ;;  %s1923_s23 = smov 127   ;;  %s1924_s28 = smov 122   ;;  %s3453_s0 = inlined_call_operand.vmem [shape: f32[64,5,5], index: 0, kind: input, shape index: {}]   ;;  %s3454_s1 = inlined_call_operand.vmem [shape: f32[320,5], index: 1, kind: output, shape index: {}]  }
   0x1   :  { %v1495_v0 = vld [vmem:[%s3453_s0 + $0x33] sm:$0x1]   ;;  %vm57_vm4 = vcmask 7168   ;;  %v1518_v14 = vld [vmem:[%s3453_s0 + $0x32] sm:$0x1]   ;;  %vm103_vm5 = vcmask 23552  }
   0x2   :  { %v1496_v1 = vld [vmem:[%s3453_s0 + $0x72] sm:$0x2]   ;;  %v1519_v17 = vld [vmem:[%s3453_s0 + $0x71] sm:$0x2]   ;;  %v1507_v23 = vld [vmem:[%s3453_s0 + $0x19] sm:$0x1]  }
   0x3   :  { %v1497_v2 = vld [vmem:[%s3453_s0 + $0xb1] sm:$0x4]   ;;  %v26_v3 = vsel %vm5_vm0, %v1496_v1, %v1495_v0  ;;  %v1520_v18 = vld [vmem:[%s3453_s0 + $0xb0] sm:$0x4]   ;;  %v117_v21 = vsel %vm5_vm0, %v1519_v17, %v1518_v14  ;;  %v1508_v24 = vld [vmem:[%s3453_s0 + $0x58] sm:$0x2]  }
   0x4   :  { %v1498_v4 = vld [vmem:[%s3453_s0 + $0xf0] sm:$0x8]   ;;  %v30_v7 = vsel %vm9_vm1, %v1497_v2, %v26_v3  ;;  %v1521_v19 = vld [vmem:[%s3453_s0 + $0xef] sm:$0x8]   ;;  %v121_v26 = vsel %vm9_vm1, %v1520_v18, %v117_v21  ;;  %v72_v27 = vsel %vm5_vm0, %v1508_v24, %v1507_v23  ;;  %v1509_v28 = vld [vmem:[%s3453_s0 + $0x97] sm:$0x4]  }
   0x5   :  { %v1499_v5 = vld [vmem:[%s3453_s0 + $0x12f] sm:$0x10]   ;;  %v34_v11 = vsel %vm13_vm2, %v1498_v4, %v30_v7  ;;  %v1522_v22 = vld [vmem:[%s3453_s0 + $0x12e] sm:$0x10]   ;;  %v1510_v29 = vld [vmem:[%s3453_s0 + $0xd6] sm:$0x8]   ;;  %v125_v32 = vsel %vm13_vm2, %v1521_v19, %v121_v26  ;;  %v76_v33 = vsel %vm9_vm1, %v1509_v28, %v72_v27 }
   0x6   :  { %v1500_v6 = vld [vmem:[%s3453_s0 + $0x33] sm:$0x1]   ;;  %v38_v15 = vsel %vm17_vm3, %v1499_v5, %v34_v11  ;;  %v1511_v30 = vld [vmem:[%s3453_s0 + $0x115] sm:$0x10]   ;;  %v129_v37 = vsel %vm17_vm3, %v1522_v22, %v125_v32  ;;  %v80_v38 = vsel %vm13_vm2, %v1510_v29, %v76_v33  ;;  %v1524_v44 = vld [vmem:[%s3453_s0 + $0x18] sm:$0x1]  }
   0x7   :  { %v1501_v8 = vld [vmem:[%s3453_s0 + $0x72] sm:$0x2]   ;;  %v1512_v34 = vld [vmem:[%s3453_s0 + $0x19] sm:$0x1]   ;;  %130 = vrot.lane.b32.xlu1 %v129_v37, %s1924_s28  ;;  %v84_v42 = vsel %vm17_vm3, %v1511_v30, %v80_v38  ;;  %v1525_v45 = vld [vmem:[%s3453_s0 + $0x57] sm:$0x2]  }
   0x8   :  { %v1502_v9 = vld [vmem:[%s3453_s0 + $0xb1] sm:$0x4]   ;;  %v44_v12 = vsel %vm5_vm0, %v1501_v8, %v1500_v6  ;;  %v1513_v35 = vld [vmem:[%s3453_s0 + $0x58] sm:$0x2]   ;;  %v1526_v46 = vld [vmem:[%s3453_s0 + $0x96] sm:$0x4]   ;;  %v140_v48 = vsel %vm5_vm0, %v1525_v45, %v1524_v44 }
   0x9   :  { %v1503_v10 = vld [vmem:[%s3453_s0 + $0xf0] sm:$0x8]   ;;  %v48_v16 = vsel %vm9_vm1, %v1502_v9, %v44_v12  ;;  %v1514_v36 = vld [vmem:[%s3453_s0 + $0x97] sm:$0x4]   ;;  %v90_v39 = vsel %vm5_vm0, %v1513_v35, %v1512_v34  ;;  %v1527_v49 = vld [vmem:[%s3453_s0 + $0xd5] sm:$0x8]   ;;  %v144_v53 = vsel %vm9_vm1, %v1526_v46, %v140_v48 }
   0xa   :  { %v1504_v13 = vld [vmem:[%s3453_s0 + $0x12f] sm:$0x10]   ;;  %v52_v20 = vsel %vm13_vm2, %v1503_v10, %v48_v16  ;;  %v1515_v40 = vld [vmem:[%s3453_s0 + $0xd6] sm:$0x8]   ;;  %v94_v43 = vsel %vm9_vm1, %v1514_v36, %v90_v39  ;;  %v1528_v50 = vld [vmem:[%s3453_s0 + $0x114] sm:$0x10]   ;;  %v148_v58 = vsel %vm13_vm2, %v1527_v49, %v144_v53 }
   0xb   :  { %v56_v25 = vsel %vm17_vm3, %v1504_v13, %v52_v20  ;;  %v1516_v41 = vld [vmem:[%s3453_s0 + $0x115] sm:$0x10]   ;;  %v98_v47 = vsel %vm13_vm2, %v1515_v40, %v94_v43  ;;  %v1529_v51 = vld [vmem:[%s3453_s0 + $0x31] sm:$0x1]   ;;  %v1535_v61 = vld [vmem:[%s3453_s0 + $0x17] sm:$0x1]   ;;  %v152_v62 = vsel %vm17_vm3, %v1528_v50, %v148_v58 }
   0xc   :  { %v58_v31 = vsel %vm57_vm4, %v56_v25, %v38_v15  ;;  %v102_v52 = vsel %vm17_vm3, %v1516_v41, %v98_v47  ;;  %v1530_v54 = vld [vmem:[%s3453_s0 + $0x70] sm:$0x2]   ;;  %s1925_s22 = smov 125   ;;  %v1536_v0 = vld [vmem:[%s3453_s0 + $0x56] sm:$0x2]   ;;  %s1926_s29 = smov 120  }
   0xd   :  { %59 = vrot.lane.b32.xlu0 %v58_v31, %s1923_s23  ;;  %v1531_v55 = vld [vmem:[%s3453_s0 + $0xaf] sm:$0x4]   ;;  %v104_v57 = vsel %vm103_vm5, %v102_v52, %v84_v42  ;;  %v162_v59 = vsel %vm5_vm0, %v1530_v54, %v1529_v51  ;;  %v1537_v1 = vld [vmem:[%s3453_s0 + $0x95] sm:$0x4]   ;;  %153 = vrot.lane.b32.xlu1 %v152_v62, %s1926_s29  ;;  %v185_v4 = vsel %vm5_vm0, %v1536_v0, %v1535_v61  ;;  %s1927_s17 = smov 117   ;;  %s1928_s24 = smov 115  }
   0xe   :  { %v1532_v56 = vld [vmem:[%s3453_s0 + $0xee] sm:$0x8]   ;;  %v166_v63 = vsel %vm9_vm1, %v1531_v55, %v162_v59  ;;  %v1538_v2 = vld [vmem:[%s3453_s0 + $0xd4] sm:$0x8]   ;;  %v1540_v6 = vld [vmem:[%s3453_s0 + $0x30] sm:$0x1]   ;;  %v189_v9 = vsel %vm9_vm1, %v1537_v1, %v185_v4 }
   0xf   :  { %v1533_v60 = vld [vmem:[%s3453_s0 + $0x12d] sm:$0x10]   ;;  %v170_v3 = vsel %vm13_vm2, %v1532_v56, %v166_v63  ;;  %v1539_v5 = vld [vmem:[%s3453_s0 + $0x113] sm:$0x10]   ;;  %v1541_v7 = vld [vmem:[%s3453_s0 + $0x6f] sm:$0x2]   ;;  %v193_v14 = vsel %vm13_vm2, %v1538_v2, %v189_v9 }
  0x10   :  { %v174_v8 = vsel %vm17_vm3, %v1533_v60, %v170_v3  ;;  %v207_v10 = vsel %vm5_vm0, %v1541_v7, %v1540_v6  ;;  %v1542_v11 = vld [vmem:[%s3453_s0 + $0xae] sm:$0x4]   ;;  %v1546_v16 = vld [vmem:[%s3453_s0 + $0x16] sm:$0x1]   ;;  %v197_v18 = vsel %vm17_vm3, %v1539_v5, %v193_v14  ;;  %v1551_v26 = vld [vmem:[%s3453_s0 + $0x2f] sm:$0x1]  }
  0x11   :  { %105 = vrot.lane.b32.xlu0 %v104_v57, %s1925_s22  ;;  %v1543_v12 = vld [vmem:[%s3453_s0 + $0xed] sm:$0x8]   ;;  %v211_v15 = vsel %vm9_vm1, %v1542_v11, %v207_v10  ;;  %v1547_v17 = vld [vmem:[%s3453_s0 + $0x55] sm:$0x2]   ;;  %198 = vrot.lane.b32.xlu1 %v197_v18, %s1928_s24  ;;  %s1929_s12 = smov 112   ;;  %s1930_s19 = smov 110  }
  0x12   :  { %v1544_v13 = vld [vmem:[%s3453_s0 + $0x12c] sm:$0x10]   ;;  %v215_v19 = vsel %vm13_vm2, %v1543_v12, %v211_v15  ;;  %v230_v20 = vsel %vm5_vm0, %v1547_v17, %v1546_v16  ;;  %v1548_v21 = vld [vmem:[%s3453_s0 + $0x94] sm:$0x4]   ;;  %v1552_v27 = vld [vmem:[%s3453_s0 + $0x6e] sm:$0x2]  }
  0x13   :  { %v1549_v22 = vld [vmem:[%s3453_s0 + $0xd3] sm:$0x8]   ;;  %v219_v24 = vsel %vm17_vm3, %v1544_v13, %v215_v19  ;;  %v234_v25 = vsel %vm9_vm1, %v1548_v21, %v230_v20  ;;  %v1553_v28 = vld [vmem:[%s3453_s0 + $0xad] sm:$0x4]   ;;  %v252_v30 = vsel %vm5_vm0, %v1552_v27, %v1551_v26  ;;  %v1557_v35 = vld [vmem:[%s3453_s0 + $0x15] sm:$0x1]  }
  0x14   :  { %v1550_v23 = vld [vmem:[%s3453_s0 + $0x112] sm:$0x10]   ;;  %v238_v29 = vsel %vm13_vm2, %v1549_v22, %v234_v25  ;;  %v1554_v31 = vld [vmem:[%s3453_s0 + $0xec] sm:$0x8]   ;;  %v256_v34 = vsel %vm9_vm1, %v1553_v28, %v252_v30  ;;  %v1558_v36 = vld [vmem:[%s3453_s0 + $0x54] sm:$0x2]  }
  0x15   :  { %175 = vrot.lane.b32.xlu0 %v174_v8, %s1927_s17  ;;  %v1555_v32 = vld [vmem:[%s3453_s0 + $0x12b] sm:$0x10]   ;;  %v242_v33 = vsel %vm17_vm3, %v1550_v23, %v238_v29  ;;  %v1559_v37 = vld [vmem:[%s3453_s0 + $0x93] sm:$0x4]   ;;  %v260_v38 = vsel %vm13_vm2, %v1554_v31, %v256_v34  ;;  %v275_v39 = vsel %vm5_vm0, %v1558_v36, %v1557_v35  ;;  %v1562_v42 = vld [vmem:[%s3453_s0 + $0x2e] sm:$0x1]  }
  0x16   :  { %v1560_v40 = vld [vmem:[%s3453_s0 + $0xd2] sm:$0x8]   ;;  %243 = vrot.lane.b32.xlu1 %v242_v33, %s1930_s19  ;;  %v264_v43 = vsel %vm17_vm3, %v1555_v32, %v260_v38  ;;  %v279_v44 = vsel %vm9_vm1, %v1559_v37, %v275_v39  ;;  %v1563_v45 = vld [vmem:[%s3453_s0 + $0x6d] sm:$0x2]   ;;  %v1568_v51 = vld [vmem:[%s3453_s0 + $0x14] sm:$0x1]  }
  0x17   :  { %v1561_v41 = vld [vmem:[%s3453_s0 + $0x111] sm:$0x10]   ;;  %v1564_v46 = vld [vmem:[%s3453_s0 + $0xac] sm:$0x4]   ;;  %v283_v48 = vsel %vm13_vm2, %v1560_v40, %v279_v44  ;;  %v297_v49 = vsel %vm5_vm0, %v1563_v45, %v1562_v42  ;;  %v1569_v54 = vld [vmem:[%s3453_s0 + $0x53] sm:$0x2]  }
  0x18   :  { %v1565_v47 = vld [vmem:[%s3453_s0 + $0xeb] sm:$0x8]   ;;  %v287_v52 = vsel %vm17_vm3, %v1561_v41, %v283_v48  ;;  %v301_v53 = vsel %vm9_vm1, %v1564_v46, %v297_v49  ;;  %v1570_v55 = vld [vmem:[%s3453_s0 + $0x92] sm:$0x4]   ;;  %s1931_s7 = smov 107   ;;  %v320_v58 = vsel %vm5_vm0, %v1569_v54, %v1568_v51  ;;  %s1932_s14 = smov 105  }
  0x19   :  { %220 = vrot.lane.b32.xlu0 %v219_v24, %s1929_s12  ;;  %v1566_v50 = vld [vmem:[%s3453_s0 + $0x12a] sm:$0x10]   ;;  %v1571_v56 = vld [vmem:[%s3453_s0 + $0xd1] sm:$0x8]   ;;  %v305_v57 = vsel %vm13_vm2, %v1565_v47, %v301_v53  ;;  %v1573_v60 = vld [vmem:[%s3453_s0 + $0x2d] sm:$0x1]   ;;  %v324_v63 = vsel %vm9_vm1, %v1570_v55, %v320_v58 }
  0x1a   :  { %v1572_v59 = vld [vmem:[%s3453_s0 + $0x110] sm:$0x10]   ;;  %v1574_v61 = vld [vmem:[%s3453_s0 + $0x6c] sm:$0x2]   ;;  %288 = vrot.lane.b32.xlu1 %v287_v52, %s1932_s14  ;;  %v309_v62 = vsel %vm17_vm3, %v1566_v50, %v305_v57  ;;  %v328_v3 = vsel %vm13_vm2, %v1571_v56, %v324_v63  ;;  %v1579_v6 = vld [vmem:[%s3453_s0 + $0x13] sm:$0x1]  }
  0x1b   :  { %v342_v0 = vsel %vm5_vm0, %v1574_v61, %v1573_v60  ;;  %v1575_v1 = vld [vmem:[%s3453_s0 + $0xab] sm:$0x4]   ;;  %v1580_v7 = vld [vmem:[%s3453_s0 + $0x52] sm:$0x2]   ;;  %v332_v8 = vsel %vm17_vm3, %v1572_v59, %v328_v3  ;;  %s1933_s2 = smov 102   ;;  %s1934_s9 = smov 100  }
  0x1c   :  { %v1576_v2 = vld [vmem:[%s3453_s0 + $0xea] sm:$0x8]   ;;  %v346_v4 = vsel %vm9_vm1, %v1575_v1, %v342_v0  ;;  %v365_v10 = vsel %vm5_vm0, %v1580_v7, %v1579_v6  ;;  %v1581_v11 = vld [vmem:[%s3453_s0 + $0x91] sm:$0x4]   ;;  %v1584_v15 = vld [vmem:[%s3453_s0 + $0x2c] sm:$0x1]  }
  0x1d   :  { %265 = vrot.lane.b32.xlu0 %v264_v43, %s1931_s7  ;;  %v1577_v5 = vld [vmem:[%s3453_s0 + $0x129] sm:$0x10]   ;;  %v350_v9 = vsel %vm13_vm2, %v1576_v2, %v346_v4  ;;  %v1582_v12 = vld [vmem:[%s3453_s0 + $0xd0] sm:$0x8]   ;;  %v369_v14 = vsel %vm9_vm1, %v1581_v11, %v365_v10  ;;  %v1585_v16 = vld [vmem:[%s3453_s0 + $0x6b] sm:$0x2]  }
  0x1e   :  { %v1583_v13 = vld [vmem:[%s3453_s0 + $0x10f] sm:$0x10]   ;;  %v1586_v17 = vld [vmem:[%s3453_s0 + $0xaa] sm:$0x4]   ;;  %333 = vrot.lane.b32.xlu1 %v332_v8, %s1934_s9  ;;  %v354_v18 = vsel %vm17_vm3, %v1577_v5, %v350_v9  ;;  %v373_v19 = vsel %vm13_vm2, %v1582_v12, %v369_v14  ;;  %v387_v20 = vsel %vm5_vm0, %v1585_v16, %v1584_v15  ;;  %v1590_v25 = vld [vmem:[%s3453_s0 + $0x12] sm:$0x1]  }
  0x1f   :  { %v1587_v21 = vld [vmem:[%s3453_s0 + $0xe9] sm:$0x8]   ;;  %v377_v23 = vsel %vm17_vm3, %v1583_v13, %v373_v19  ;;  %v391_v24 = vsel %vm9_vm1, %v1586_v17, %v387_v20  ;;  %v1591_v26 = vld [vmem:[%s3453_s0 + $0x51] sm:$0x2]   ;;  %v1595_v32 = vld [vmem:[%s3453_s0 + $0x2b] sm:$0x1]  }
  0x20   :  { %v1588_v22 = vld [vmem:[%s3453_s0 + $0x128] sm:$0x10]   ;;  %v1592_v27 = vld [vmem:[%s3453_s0 + $0x90] sm:$0x4]   ;;  %v395_v28 = vsel %vm13_vm2, %v1587_v21, %v391_v24  ;;  %v410_v29 = vsel %vm5_vm0, %v1591_v26, %v1590_v25  ;;  %s1935_s26 = smov 97   ;;  %s1936_s4 = smov 95  }
  0x21   :  { %310 = vrot.lane.b32.xlu0 %v309_v62, %s1933_s2  ;;  %v1593_v30 = vld [vmem:[%s3453_s0 + $0xcf] sm:$0x8]   ;;  %v414_v33 = vsel %vm9_vm1, %v1592_v27, %v410_v29  ;;  %v1596_v34 = vld [vmem:[%s3453_s0 + $0x6a] sm:$0x2]   ;;  %v399_v37 = vsel %vm17_vm3, %v1588_v22, %v395_v28  ;;  %v1601_v41 = vld [vmem:[%s3453_s0 + $0x11] sm:$0x1]  }
  0x22   :  { %v1594_v31 = vld [vmem:[%s3453_s0 + $0x10e] sm:$0x10]   ;;  %v1597_v35 = vld [vmem:[%s3453_s0 + $0xa9] sm:$0x4]   ;;  %378 = vrot.lane.b32.xlu1 %v377_v23, %s1936_s4  ;;  %v418_v38 = vsel %vm13_vm2, %v1593_v30, %v414_v33  ;;  %v432_v39 = vsel %vm5_vm0, %v1596_v34, %v1595_v32  ;;  %v1602_v44 = vld [vmem:[%s3453_s0 + $0x50] sm:$0x2]  }
  0x23   :  { %v1598_v36 = vld [vmem:[%s3453_s0 + $0xe8] sm:$0x8]   ;;  %v422_v42 = vsel %vm17_vm3, %v1594_v31, %v418_v38  ;;  %v436_v43 = vsel %vm9_vm1, %v1597_v35, %v432_v39  ;;  %v1603_v45 = vld [vmem:[%s3453_s0 + $0x8f] sm:$0x4]   ;;  %v455_v48 = vsel %vm5_vm0, %v1602_v44, %v1601_v41  ;;  %v1606_v50 = vld [vmem:[%s3453_s0 + $0x2a] sm:$0x1]  }
  0x24   :  { %v1599_v40 = vld [vmem:[%s3453_s0 + $0x127] sm:$0x10]   ;;  %v1604_v46 = vld [vmem:[%s3453_s0 + $0xce] sm:$0x8]   ;;  %v440_v47 = vsel %vm13_vm2, %v1598_v36, %v436_v43  ;;  %v1607_v51 = vld [vmem:[%s3453_s0 + $0x69] sm:$0x2]   ;;  %v459_v52 = vsel %vm9_vm1, %v1603_v45, %v455_v48 }
  0x25   :  { %355 = vrot.lane.b32.xlu0 %v354_v18, %s1935_s26  ;;  %v1605_v49 = vld [vmem:[%s3453_s0 + $0x10d] sm:$0x10]   ;;  %s1937_s21 = smov 92   ;;  %v477_v53 = vsel %vm5_vm0, %v1607_v51, %v1606_v50  ;;  %v1608_v54 = vld [vmem:[%s3453_s0 + $0xa8] sm:$0x4]   ;;  %s1938_s26 = smov 90   ;;  %v444_v56 = vsel %vm17_vm3, %v1599_v40, %v440_v47  ;;  %v463_v57 = vsel %vm13_vm2, %v1604_v46, %v459_v52 }
  0x26   :  { %v1609_v55 = vld [vmem:[%s3453_s0 + $0xe7] sm:$0x8]   ;;  %423 = vrot.lane.b32.xlu1 %v422_v42, %s1938_s26  ;;  %v481_v58 = vsel %vm9_vm1, %v1608_v54, %v477_v53  ;;  %v1612_v60 = vld [vmem:[%s3453_s0 + $0x10] sm:$0x1]   ;;  %v467_v62 = vsel %vm17_vm3, %v1605_v49, %v463_v57  ;;  %v1617_v5 = vld [vmem:[%s3453_s0 + $0x29] sm:$0x1]  }
  0x27   :  { %v1610_v59 = vld [vmem:[%s3453_s0 + $0x126] sm:$0x10]   ;;  %v1613_v61 = vld [vmem:[%s3453_s0 + $0x4f] sm:$0x2]   ;;  %v485_v63 = vsel %vm13_vm2, %v1609_v55, %v481_v58  ;;  %v1618_v6 = vld [vmem:[%s3453_s0 + $0x68] sm:$0x2]  }
  0x28   :  { %v500_v0 = vsel %vm5_vm0, %v1613_v61, %v1612_v60  ;;  %v1614_v1 = vld [vmem:[%s3453_s0 + $0x8e] sm:$0x4]   ;;  %v1619_v7 = vld [vmem:[%s3453_s0 + $0xa7] sm:$0x4]   ;;  %s1939_s16 = smov 87   ;;  %v522_v9 = vsel %vm5_vm0, %v1618_v6, %v1617_v5  ;;  %v489_v12 = vsel %vm17_vm3, %v1610_v59, %v485_v63  ;;  %s1941_s11 = smov 82  }
  0x29   :  { %400 = vrot.lane.b32.xlu0 %v399_v37, %s1937_s21  ;;  %v1615_v2 = vld [vmem:[%s3453_s0 + $0xcd] sm:$0x8]   ;;  %v504_v4 = vsel %vm9_vm1, %v1614_v1, %v500_v0  ;;  %v1620_v10 = vld [vmem:[%s3453_s0 + $0xe6] sm:$0x8]   ;;  %s1940_s21 = smov 85   ;;  %v526_v13 = vsel %vm9_vm1, %v1619_v7, %v522_v9  ;;  %s1942_s14 = smov 80  }
  0x2a   :  { %v1616_v3 = vld [vmem:[%s3453_s0 + $0x10c] sm:$0x10]   ;;  %v508_v8 = vsel %vm13_vm2, %v1615_v2, %v504_v4  ;;  %v1621_v11 = vld [vmem:[%s3453_s0 + $0x125] sm:$0x10]   ;;  %468 = vrot.lane.b32.xlu1 %v467_v62, %s1940_s21  ;;  %v1623_v14 = vld [vmem:[%s3453_s0 + $0xf] sm:$0x1]   ;;  %v530_v18 = vsel %vm13_vm2, %v1620_v10, %v526_v13 }
  0x2b   :  { %v1624_v15 = vld [vmem:[%s3453_s0 + $0x4e] sm:$0x2]   ;;  %v512_v17 = vsel %vm17_vm3, %v1616_v3, %v508_v8  ;;  %v1628_v22 = vld [vmem:[%s3453_s0 + $0x28] sm:$0x1]   ;;  %v1634_v29 = vld [vmem:[%s3453_s0 + $0xe] sm:$0x1]   ;;  %v534_v30 = vsel %vm17_vm3, %v1621_v11, %v530_v18 }
  0x2c   :  { %v1625_v16 = vld [vmem:[%s3453_s0 + $0x8d] sm:$0x4]   ;;  %v545_v19 = vsel %vm5_vm0, %v1624_v15, %v1623_v14  ;;  %v1629_v24 = vld [vmem:[%s3453_s0 + $0x67] sm:$0x2]   ;;  %v1635_v32 = vld [vmem:[%s3453_s0 + $0x4d] sm:$0x2]  }
  0x2d   :  { %445 = vrot.lane.b32.xlu0 %v444_v56, %s1939_s16  ;;  %v1626_v20 = vld [vmem:[%s3453_s0 + $0xcc] sm:$0x8]   ;;  %v549_v23 = vsel %vm9_vm1, %v1625_v16, %v545_v19  ;;  %v1630_v25 = vld [vmem:[%s3453_s0 + $0xa6] sm:$0x4]   ;;  %v567_v28 = vsel %vm5_vm0, %v1629_v24, %v1628_v22  ;;  %v1636_v33 = vld [vmem:[%s3453_s0 + $0x8c] sm:$0x4]   ;;  %v590_v38 = vsel %vm5_vm0, %v1635_v32, %v1634_v29 }
  0x2e   :  { %v1627_v21 = vld [vmem:[%s3453_s0 + $0x10b] sm:$0x10]   ;;  %v1631_v26 = vld [vmem:[%s3453_s0 + $0xe5] sm:$0x8]   ;;  %v553_v27 = vsel %vm13_vm2, %v1626_v20, %v549_v23  ;;  %513 = vrot.lane.b32.xlu1 %v512_v17, %s1942_s14  ;;  %v571_v31 = vsel %vm9_vm1, %v1630_v25, %v567_v28  ;;  %v1637_v34 = vld [vmem:[%s3453_s0 + $0xcb] sm:$0x8]   ;;  %v594_v41 = vsel %vm9_vm1, %v1636_v33, %v590_v38 }
  0x2f   :  { %v557_v35 = vsel %vm17_vm3, %v1627_v21, %v553_v27  ;;  %v575_v36 = vsel %vm13_vm2, %v1631_v26, %v571_v31  ;;  %v1632_v37 = vld [vmem:[%s3453_s0 + $0x124] sm:$0x10]   ;;  %v1639_v39 = vld [vmem:[%s3453_s0 + $0x27] sm:$0x1]   ;;  %v1638_v42 = vld [vmem:[%s3453_s0 + $0x10a] sm:$0x10]   ;;  %v598_v46 = vsel %vm13_vm2, %v1637_v34, %v594_v41 }
  0x30   :  { %v1640_v40 = vld [vmem:[%s3453_s0 + $0x66] sm:$0x2]   ;;  %s1943_s4 = smov 77   ;;  %v1645_v48 = vld [vmem:[%s3453_s0 + $0xd] sm:$0x1]   ;;  %s1944_s9 = smov 75   ;;  %v579_v50 = vsel %vm17_vm3, %v1632_v37, %v575_v36  ;;  %v602_v55 = vsel %vm17_vm3, %v1638_v42, %v598_v46 }
  0x31   :  { %490 = vrot.lane.b32.xlu0 %v489_v12, %s1941_s11  ;;  %v612_v43 = vsel %vm5_vm0, %v1640_v40, %v1639_v39  ;;  %v1641_v44 = vld [vmem:[%s3453_s0 + $0xa5] sm:$0x4]   ;;  %v1646_v49 = vld [vmem:[%s3453_s0 + $0x4c] sm:$0x2]   ;;  %v1650_v58 = vld [vmem:[%s3453_s0 + $0x26] sm:$0x1]  }
  0x32   :  { %v1642_v45 = vld [vmem:[%s3453_s0 + $0xe4] sm:$0x8]   ;;  %v616_v47 = vsel %vm9_vm1, %v1641_v44, %v612_v43  ;;  %558 = vrot.lane.b32.xlu1 %v557_v35, %s1944_s9  ;;  %v635_v52 = vsel %vm5_vm0, %v1646_v49, %v1645_v48  ;;  %v1647_v53 = vld [vmem:[%s3453_s0 + $0x8b] sm:$0x4]   ;;  %v1651_v59 = vld [vmem:[%s3453_s0 + $0x65] sm:$0x2]  }
  0x33   :  { %v1643_v51 = vld [vmem:[%s3453_s0 + $0x123] sm:$0x10]   ;;  %v1648_v54 = vld [vmem:[%s3453_s0 + $0xca] sm:$0x8]   ;;  %v620_v56 = vsel %vm13_vm2, %v1642_v45, %v616_v47  ;;  %v639_v57 = vsel %vm9_vm1, %v1647_v53, %v635_v52  ;;  %v1652_v60 = vld [vmem:[%s3453_s0 + $0xa4] sm:$0x4]   ;;  %v657_v63 = vsel %vm5_vm0, %v1651_v59, %v1650_v58 }
  0x34   :  { %v643_v61 = vsel %vm13_vm2, %v1648_v54, %v639_v57  ;;  %v1649_v62 = vld [vmem:[%s3453_s0 + $0x109] sm:$0x10]   ;;  %v1653_v0 = vld [vmem:[%s3453_s0 + $0xe3] sm:$0x8]   ;;  %s1945_s26 = smov 72   ;;  %v661_v1 = vsel %vm9_vm1, %v1652_v60, %v657_v63  ;;  %v624_v5 = vsel %vm17_vm3, %v1643_v51, %v620_v56  ;;  %s1947_s21 = smov 67  }
  0x35   :  { %535 = vrot.lane.b32.xlu0 %v534_v30, %s1943_s4  ;;  %v1656_v2 = vld [vmem:[%s3453_s0 + $0xc] sm:$0x1]   ;;  %s1946_s4 = smov 70   ;;  %v1661_v8 = vld [vmem:[%s3453_s0 + $0x3f] sm:$0x1]   ;;  %v647_v9 = vsel %vm17_vm3, %v1649_v62, %v643_v61  ;;  %v665_v10 = vsel %vm13_vm2, %v1653_v0, %v661_v1  ;;  %s1948_s28 = smov 65  }
  0x36   :  { %v1657_v3 = vld [vmem:[%s3453_s0 + $0x4b] sm:$0x2]   ;;  %603 = vrot.lane.b32.xlu1 %v602_v55, %s1946_s4  ;;  %v1654_v11 = vld [vmem:[%s3453_s0 + $0x122] sm:$0x10]   ;;  %v1662_v13 = vld [vmem:[%s3453_s0 + $0x7e] sm:$0x2]  }
  0x37   :  { %v1658_v4 = vld [vmem:[%s3453_s0 + $0x8a] sm:$0x4]   ;;  %v680_v6 = vsel %vm5_vm0, %v1657_v3, %v1656_v2  ;;  %v1663_v14 = vld [vmem:[%s3453_s0 + $0xbd] sm:$0x4]   ;;  %v702_v17 = vsel %vm5_vm0, %v1662_v13, %v1661_v8  ;;  %v1667_v19 = vld [vmem:[%s3453_s0 + $0x25] sm:$0x1]   ;;  %v669_v24 = vsel %vm17_vm3, %v1654_v11, %v665_v10 }
  0x38   :  { %v1659_v7 = vld [vmem:[%s3453_s0 + $0xc9] sm:$0x8]   ;;  %v684_v12 = vsel %vm9_vm1, %v1658_v4, %v680_v6  ;;  %v1664_v18 = vld [vmem:[%s3453_s0 + $0xfc] sm:$0x8]   ;;  %v706_v20 = vsel %vm9_vm1, %v1663_v14, %v702_v17  ;;  %v1668_v21 = vld [vmem:[%s3453_s0 + $0x64] sm:$0x2]  }
  0x39   :  { %580 = vrot.lane.b32.xlu0 %v579_v50, %s1945_s26  ;;  %v688_v15 = vsel %vm13_vm2, %v1659_v7, %v684_v12  ;;  %v1660_v16 = vld [vmem:[%s3453_s0 + $0x108] sm:$0x10]   ;;  %v1669_v22 = vld [vmem:[%s3453_s0 + $0xa3] sm:$0x4]   ;;  %v725_v25 = vsel %vm5_vm0, %v1668_v21, %v1667_v19  ;;  %v1673_v26 = vld [vmem:[%s3453_s0 + $0xb] sm:$0x1]   ;;  %v710_v29 = vsel %vm13_vm2, %v1664_v18, %v706_v20 }
  0x3a   :  { %v1670_v23 = vld [vmem:[%s3453_s0 + $0xe2] sm:$0x8]   ;;  %648 = vrot.lane.b32.xlu1 %v647_v9, %s1948_s28  ;;  %v1674_v27 = vld [vmem:[%s3453_s0 + $0x4a] sm:$0x2]   ;;  %v692_v28 = vsel %vm17_vm3, %v1660_v16, %v688_v15  ;;  %v1665_v30 = vld [vmem:[%s3453_s0 + $0x13b] sm:$0x10]   ;;  %v729_v31 = vsel %vm9_vm1, %v1669_v22, %v725_v25 }
  0x3b   :  { %v1671_v32 = vld [vmem:[%s3453_s0 + $0x121] sm:$0x10]   ;;  %v748_v33 = vsel %vm5_vm0, %v1674_v27, %v1673_v26  ;;  %v1675_v34 = vld [vmem:[%s3453_s0 + $0x89] sm:$0x4]   ;;  %v733_v35 = vsel %vm13_vm2, %v1670_v23, %v729_v31  ;;  %v1678_v38 = vld [vmem:[%s3453_s0 + $0x3e] sm:$0x1]   ;;  %v714_v43 = vsel %vm17_vm3, %v1665_v30, %v710_v29 }
  0x3c   :  { %v752_v36 = vsel %vm9_vm1, %v1675_v34, %v748_v33  ;;  %v1676_v37 = vld [vmem:[%s3453_s0 + $0xc8] sm:$0x8]   ;;  %v1679_v39 = vld [vmem:[%s3453_s0 + $0x7d] sm:$0x2]   ;;  %s1949_s16 = smov 62   ;;  %v737_v48 = vsel %vm17_vm3, %v1671_v32, %v733_v35  ;;  %s1951_s11 = smov 59  }
  0x3d   :  { %625 = vrot.lane.b32.xlu0 %v624_v5, %s1947_s21  ;;  %v770_v40 = vsel %vm5_vm0, %v1679_v39, %v1678_v38  ;;  %v1680_v41 = vld [vmem:[%s3453_s0 + $0xbc] sm:$0x4]   ;;  %s1950_s21 = smov 60   ;;  %v1684_v45 = vld [vmem:[%s3453_s0 + $0x24] sm:$0x1]   ;;  %v756_v49 = vsel %vm13_vm2, %v1676_v37, %v752_v36  ;;  %s1953_s4 = smov 55  }
  0x3e   :  { %v1681_v42 = vld [vmem:[%s3453_s0 + $0xfb] sm:$0x8]   ;;  %693 = vrot.lane.b32.xlu1 %v692_v28, %s1950_s21  ;;  %v774_v44 = vsel %vm9_vm1, %v1680_v41, %v770_v40  ;;  %v1685_v46 = vld [vmem:[%s3453_s0 + $0x63] sm:$0x2]   ;;  %v1677_v50 = vld [vmem:[%s3453_s0 + $0x107] sm:$0x10]  }
  0x3f   :  { %v1686_v47 = vld [vmem:[%s3453_s0 + $0xa2] sm:$0x4]   ;;  %v1682_v51 = vld [vmem:[%s3453_s0 + $0x13a] sm:$0x10]   ;;  %v793_v52 = vsel %vm5_vm0, %v1685_v46, %v1684_v45  ;;  %v778_v54 = vsel %vm13_vm2, %v1681_v42, %v774_v44  ;;  %v1690_v56 = vld [vmem:[%s3453_s0 + $0xa] sm:$0x1]   ;;  %v760_v62 = vsel %vm17_vm3, %v1677_v50, %v756_v49 }
  0x40   :  { %v1687_v53 = vld [vmem:[%s3453_s0 + $0xe1] sm:$0x8]   ;;  %v797_v55 = vsel %vm9_vm1, %v1686_v47, %v793_v52  ;;  %v1691_v57 = vld [vmem:[%s3453_s0 + $0x49] sm:$0x2]   ;;  %v1695_v61 = vld [vmem:[%s3453_s0 + $0x3d] sm:$0x1]   ;;  %v782_v2 = vsel %vm17_vm3, %v1682_v51, %v778_v54 }
  0x41   :  { %670 = vrot.lane.b32.xlu0 %v669_v24, %s1949_s16  ;;  %v1692_v58 = vld [vmem:[%s3453_s0 + $0x88] sm:$0x4]   ;;  %v816_v59 = vsel %vm5_vm0, %v1691_v57, %v1690_v56  ;;  %s1952_s16 = smov 57   ;;  %v1696_v0 = vld [vmem:[%s3453_s0 + $0x7c] sm:$0x2]   ;;  %v801_v3 = vsel %vm13_vm2, %v1687_v53, %v797_v55  ;;  %s1955_s28 = smov 52  }
  0x42   :  { %v1693_v60 = vld [vmem:[%s3453_s0 + $0xc7] sm:$0x8]   ;;  %738 = vrot.lane.b32.xlu1 %v737_v48, %s1952_s16  ;;  %v820_v63 = vsel %vm9_vm1, %v1692_v58, %v816_v59  ;;  %v1697_v1 = vld [vmem:[%s3453_s0 + $0xbb] sm:$0x4]   ;;  %v1688_v4 = vld [vmem:[%s3453_s0 + $0x120] sm:$0x10]   ;;  %v838_v6 = vsel %vm5_vm0, %v1696_v0, %v1695_v61 }
  0x43   :  { %v1694_v5 = vld [vmem:[%s3453_s0 + $0x106] sm:$0x10]   ;;  %v1701_v7 = vld [vmem:[%s3453_s0 + $0x23] sm:$0x1]   ;;  %v824_v8 = vsel %vm13_vm2, %v1693_v60, %v820_v63  ;;  %v842_v9 = vsel %vm9_vm1, %v1697_v1, %v838_v6  ;;  %v1698_v10 = vld [vmem:[%s3453_s0 + $0xfa] sm:$0x8]   ;;  %v805_v17 = vsel %vm17_vm3, %v1688_v4, %v801_v3 }
  0x44   :  { %v1702_v11 = vld [vmem:[%s3453_s0 + $0x62] sm:$0x2]   ;;  %v1707_v15 = vld [vmem:[%s3453_s0 + $0x9] sm:$0x1]   ;;  %v1699_v18 = vld [vmem:[%s3453_s0 + $0x139] sm:$0x10]   ;;  %v828_v22 = vsel %vm17_vm3, %v1694_v5, %v824_v8  ;;  %v846_v23 = vsel %vm13_vm2, %v1698_v10, %v842_v9 }
  0x45   :  { %715 = vrot.lane.b32.xlu0 %v714_v43, %s1951_s11  ;;  %v1703_v12 = vld [vmem:[%s3453_s0 + $0xa1] sm:$0x4]   ;;  %v861_v13 = vsel %vm5_vm0, %v1702_v11, %v1701_v7  ;;  %v1708_v16 = vld [vmem:[%s3453_s0 + $0x48] sm:$0x2]   ;;  %s1954_s11 = smov 54   ;;  %s1956_s6 = smov 50   ;;  %v850_v37 = vsel %vm17_vm3, %v1699_v18, %v846_v23 }
  0x46   :  { %v1704_v14 = vld [vmem:[%s3453_s0 + $0xe0] sm:$0x8]   ;;  %783 = vrot.lane.b32.xlu1 %v782_v2, %s1954_s11  ;;  %v865_v19 = vsel %vm9_vm1, %v1703_v12, %v861_v13  ;;  %v884_v20 = vsel %vm5_vm0, %v1708_v16, %v1707_v15  ;;  %v1709_v21 = vld [vmem:[%s3453_s0 + $0x87] sm:$0x4]   ;;  %v1712_v25 = vld [vmem:[%s3453_s0 + $0x3c] sm:$0x1]  }
  0x47   :  { %v1705_v24 = vld [vmem:[%s3453_s0 + $0x11f] sm:$0x10]   ;;  %v1713_v26 = vld [vmem:[%s3453_s0 + $0x7b] sm:$0x2]   ;;  %v869_v27 = vsel %vm13_vm2, %v1704_v14, %v865_v19  ;;  %v888_v28 = vsel %vm9_vm1, %v1709_v21, %v884_v20  ;;  %v1710_v29 = vld [vmem:[%s3453_s0 + $0xc6] sm:$0x8]  }
  0x48   :  { %v906_v30 = vsel %vm5_vm0, %v1713_v26, %v1712_v25  ;;  %v1714_v31 = vld [vmem:[%s3453_s0 + $0xba] sm:$0x4]   ;;  %v1718_v34 = vld [vmem:[%s3453_s0 + $0x22] sm:$0x1]   ;;  %v1711_v38 = vld [vmem:[%s3453_s0 + $0x105] sm:$0x10]   ;;  %v873_v40 = vsel %vm17_vm3, %v1705_v24, %v869_v27  ;;  %v892_v41 = vsel %vm13_vm2, %v1710_v29, %v888_v28 }
  0x49   :  { %761 = vrot.lane.b32.xlu0 %v760_v62, %s1953_s4  ;;  %v1715_v32 = vld [vmem:[%s3453_s0 + $0xf9] sm:$0x8]   ;;  %v910_v33 = vsel %vm9_vm1, %v1714_v31, %v906_v30  ;;  %v1719_v35 = vld [vmem:[%s3453_s0 + $0x61] sm:$0x2]   ;;  %v1724_v42 = vld [vmem:[%s3453_s0 + $0x8] sm:$0x1]   ;;  %v896_v55 = vsel %vm17_vm3, %v1711_v38, %v892_v41 }
  0x4a   :  { %v1720_v36 = vld [vmem:[%s3453_s0 + $0xa0] sm:$0x4]   ;;  %829 = vrot.lane.b32.xlu1 %v828_v22, %s1956_s6  ;;  %v929_v39 = vsel %vm5_vm0, %v1719_v35, %v1718_v34  ;;  %v1725_v43 = vld [vmem:[%s3453_s0 + $0x47] sm:$0x2]   ;;  %v914_v45 = vsel %vm13_vm2, %v1715_v32, %v910_v33  ;;  %v1716_v46 = vld [vmem:[%s3453_s0 + $0x138] sm:$0x10]  }
  0x4b   :  { %v1726_v44 = vld [vmem:[%s3453_s0 + $0x86] sm:$0x4]   ;;  %v933_v47 = vsel %vm9_vm1, %v1720_v36, %v929_v39  ;;  %v1721_v48 = vld [vmem:[%s3453_s0 + $0xdf] sm:$0x8]   ;;  %v952_v49 = vsel %vm5_vm0, %v1725_v43, %v1724_v42  ;;  %v1729_v50 = vld [vmem:[%s3453_s0 + $0x3b] sm:$0x1]   ;;  %v918_v59 = vsel %vm17_vm3, %v1716_v46, %v914_v45 }
  0x4c   :  { %s1957_s21 = smov 49   ;;  %v956_v51 = vsel %vm9_vm1, %v1726_v44, %v952_v49  ;;  %v1727_v52 = vld [vmem:[%s3453_s0 + $0xc5] sm:$0x8]   ;;  %v1730_v53 = vld [vmem:[%s3453_s0 + $0x7a] sm:$0x2]   ;;  %v937_v60 = vsel %vm13_vm2, %v1721_v48, %v933_v47  ;;  %s1959_s16 = smov 45  }
  0x4d   :  { %806 = vrot.lane.b32.xlu0 %v805_v17, %s1955_s28  ;;  %v1731_v54 = vld [vmem:[%s3453_s0 + $0xb9] sm:$0x4]   ;;  %s1958_s28 = smov 47   ;;  %v1722_v56 = vld [vmem:[%s3453_s0 + $0x11e] sm:$0x10]   ;;  %v974_v57 = vsel %vm5_vm0, %v1730_v53, %v1729_v50  ;;  %v960_v0 = vsel %vm13_vm2, %v1727_v52, %v956_v51  ;;  %s1961_s9 = smov 42  }
  0x4e   :  { %874 = vrot.lane.b32.xlu1 %v873_v40, %s1958_s28  ;;  %v1735_v58 = vld [vmem:[%s3453_s0 + $0x21] sm:$0x1]   ;;  %v1728_v61 = vld [vmem:[%s3453_s0 + $0x104] sm:$0x10]   ;;  %v978_v1 = vsel %vm9_vm1, %v1731_v54, %v974_v57  ;;  %v1732_v2 = vld [vmem:[%s3453_s0 + $0xf8] sm:$0x8]   ;;  %v941_v10 = vsel %vm17_vm3, %v1722_v56, %v937_v60 }
  0x4f   :  { %v1736_v62 = vld [vmem:[%s3453_s0 + $0x60] sm:$0x2]   ;;  %v1741_v4 = vld [vmem:[%s3453_s0 + $0x7] sm:$0x1]   ;;  %v1746_v11 = vld [vmem:[%s3453_s0 + $0x3a] sm:$0x1]   ;;  %v964_v13 = vsel %vm17_vm3, %v1728_v61, %v960_v0  ;;  %v982_v14 = vsel %vm13_vm2, %v1732_v2, %v978_v1 }
  0x50   :  { %v1737_v63 = vld [vmem:[%s3453_s0 + $0x9f] sm:$0x4]   ;;  %v997_v3 = vsel %vm5_vm0, %v1736_v62, %v1735_v58  ;;  %v1742_v5 = vld [vmem:[%s3453_s0 + $0x46] sm:$0x2]   ;;  %v1747_v12 = vld [vmem:[%s3453_s0 + $0x79] sm:$0x2]  }
  0x51   :  { %851 = vrot.lane.b32.xlu0 %v850_v37, %s1957_s21  ;;  %v1001_v6 = vsel %vm9_vm1, %v1737_v63, %v997_v3  ;;  %v1738_v7 = vld [vmem:[%s3453_s0 + $0xde] sm:$0x8]   ;;  %v1020_v8 = vsel %vm5_vm0, %v1742_v5, %v1741_v4  ;;  %v1743_v9 = vld [vmem:[%s3453_s0 + $0x85] sm:$0x4]   ;;  %s1960_s21 = smov 44   ;;  %v1042_v17 = vsel %vm5_vm0, %v1747_v12, %v1746_v11  ;;  %s1962_s14 = smov 40  }
  0x52   :  { %919 = vrot.lane.b32.xlu1 %v918_v59, %s1960_s21  ;;  %v1733_v15 = vld [vmem:[%s3453_s0 + $0x137] sm:$0x10]   ;;  %v1739_v16 = vld [vmem:[%s3453_s0 + $0x11d] sm:$0x10]   ;;  %v1748_v18 = vld [vmem:[%s3453_s0 + $0xb8] sm:$0x4]   ;;  %v1005_v19 = vsel %vm13_vm2, %v1738_v7, %v1001_v6  ;;  %v1024_v20 = vsel %vm9_vm1, %v1743_v9, %v1020_v8 }
  0x53   :  { %v1744_v21 = vld [vmem:[%s3453_s0 + $0xc4] sm:$0x8]   ;;  %v1752_v22 = vld [vmem:[%s3453_s0 + $0x20] sm:$0x1]   ;;  %v1046_v24 = vsel %vm9_vm1, %v1748_v18, %v1042_v17  ;;  %v1749_v25 = vld [vmem:[%s3453_s0 + $0xf7] sm:$0x8]   ;;  %v986_v28 = vsel %vm17_vm3, %v1733_v15, %v982_v14  ;;  %v1009_v32 = vsel %vm17_vm3, %v1739_v16, %v1005_v19 }
  0x54   :  { %v1753_v23 = vld [vmem:[%s3453_s0 + $0x5f] sm:$0x2]   ;;  %v1758_v29 = vld [vmem:[%s3453_s0 + $0x6] sm:$0x1]   ;;  %v1028_v33 = vsel %vm13_vm2, %v1744_v21, %v1024_v20  ;;  %v1745_v34 = vld [vmem:[%s3453_s0 + $0x103] sm:$0x10]   ;;  %v1050_v37 = vsel %vm13_vm2, %v1749_v25, %v1046_v24 }
  0x55   :  { %897 = vrot.lane.b32.xlu0 %v896_v55, %s1959_s16  ;;  %v1065_v26 = vsel %vm5_vm0, %v1753_v23, %v1752_v22  ;;  %v1754_v27 = vld [vmem:[%s3453_s0 + $0x9e] sm:$0x4]   ;;  %v1759_v30 = vld [vmem:[%s3453_s0 + $0x45] sm:$0x2]   ;;  %v1763_v36 = vld [vmem:[%s3453_s0 + $0x39] sm:$0x1]   ;;  %v1032_v47 = vsel %vm17_vm3, %v1745_v34, %v1028_v33 }
  0x56   :  { %965 = vrot.lane.b32.xlu1 %v964_v13, %s1962_s14  ;;  %v1760_v31 = vld [vmem:[%s3453_s0 + $0x84] sm:$0x4]   ;;  %v1088_v35 = vsel %vm5_vm0, %v1759_v30, %v1758_v29  ;;  %v1750_v38 = vld [vmem:[%s3453_s0 + $0x136] sm:$0x10]   ;;  %v1069_v39 = vsel %vm9_vm1, %v1754_v27, %v1065_v26  ;;  %v1755_v40 = vld [vmem:[%s3453_s0 + $0xdd] sm:$0x8]  }
  0x57   :  { %v1764_v41 = vld [vmem:[%s3453_s0 + $0x78] sm:$0x2]   ;;  %s1963_s2 = smov 39   ;;  %v1092_v42 = vsel %vm9_vm1, %v1760_v31, %v1088_v35  ;;  %v1761_v43 = vld [vmem:[%s3453_s0 + $0xc3] sm:$0x8]   ;;  %v1054_v50 = vsel %vm17_vm3, %v1750_v38, %v1050_v37  ;;  %v1073_v51 = vsel %vm13_vm2, %v1755_v40, %v1069_v39  ;;  %s1965_s26 = smov 35  }
  0x58   :  { %v1110_v44 = vsel %vm5_vm0, %v1764_v41, %v1763_v36  ;;  %v1765_v45 = vld [vmem:[%s3453_s0 + $0xb7] sm:$0x4]   ;;  %v1769_v46 = vld [vmem:[%s3453_s0 + $0x1f] sm:$0x1]   ;;  %v1756_v52 = vld [vmem:[%s3453_s0 + $0x11c] sm:$0x10]   ;;  %v1096_v56 = vsel %vm13_vm2, %v1761_v43, %v1092_v42 }
  0x59   :  { %942 = vrot.lane.b32.xlu0 %v941_v10, %s1961_s9  ;;  %s1964_s9 = smov 37   ;;  %v1770_v48 = vld [vmem:[%s3453_s0 + $0x5e] sm:$0x2]   ;;  %v1775_v54 = vld [vmem:[%s3453_s0 + $0x5] sm:$0x1]   ;;  %v1114_v58 = vsel %vm9_vm1, %v1765_v45, %v1110_v44  ;;  %s1966_s4 = smov 34   ;;  %v1077_v2 = vsel %vm17_vm3, %v1756_v52, %v1073_v51 }
  0x5a   :  { %1010 = vrot.lane.b32.xlu1 %v1009_v32, %s1964_s9  ;;  %v1771_v49 = vld [vmem:[%s3453_s0 + $0x9d] sm:$0x4]   ;;  %v1133_v53 = vsel %vm5_vm0, %v1770_v48, %v1769_v46  ;;  %v1776_v55 = vld [vmem:[%s3453_s0 + $0x44] sm:$0x2]   ;;  %v1762_v57 = vld [vmem:[%s3453_s0 + $0x102] sm:$0x10]  }
  0x5b   :  { %v1766_v59 = vld [vmem:[%s3453_s0 + $0xf6] sm:$0x8]   ;;  %v1772_v60 = vld [vmem:[%s3453_s0 + $0xdc] sm:$0x8]   ;;  %v1137_v61 = vsel %vm9_vm1, %v1771_v49, %v1133_v53  ;;  %v1156_v62 = vsel %vm5_vm0, %v1776_v55, %v1775_v54  ;;  %v1777_v63 = vld [vmem:[%s3453_s0 + $0x83] sm:$0x4]   ;;  %v1100_v5 = vsel %vm17_vm3, %v1762_v57, %v1096_v56 }
  0x5c   :  { %v1780_v0 = vld [vmem:[%s3453_s0 + $0x38] sm:$0x1]   ;;  %v1118_v6 = vsel %vm13_vm2, %v1766_v59, %v1114_v58  ;;  %v1767_v7 = vld [vmem:[%s3453_s0 + $0x135] sm:$0x10]   ;;  %v1786_v8 = vld [vmem:[%s3453_s0 + $0x1e] sm:$0x1]   ;;  %v1141_v10 = vsel %vm13_vm2, %v1772_v60, %v1137_v61  ;;  %v1160_v12 = vsel %vm9_vm1, %v1777_v63, %v1156_v62 }
  0x5d   :  { %987 = vrot.lane.b32.xlu0 %v986_v28, %s1963_s2  ;;  %v1781_v1 = vld [vmem:[%s3453_s0 + $0x77] sm:$0x2]   ;;  %v1787_v9 = vld [vmem:[%s3453_s0 + $0x5d] sm:$0x2]   ;;  %v1773_v11 = vld [vmem:[%s3453_s0 + $0x11b] sm:$0x10]   ;;  %v1122_v20 = vsel %vm17_vm3, %v1767_v7, %v1118_v6 }
  0x5e   :  { %1055 = vrot.lane.b32.xlu1 %v1054_v50, %s1966_s4  ;;  %v1178_v3 = vsel %vm5_vm0, %v1781_v1, %v1780_v0  ;;  %v1782_v4 = vld [vmem:[%s3453_s0 + $0xb6] sm:$0x4]   ;;  %v1778_v13 = vld [vmem:[%s3453_s0 + $0xc2] sm:$0x8]   ;;  %s1967_s19 = smov 32   ;;  %v1201_v16 = vsel %vm5_vm0, %v1787_v9, %v1786_v8  ;;  %v1145_v24 = vsel %vm17_vm3, %v1773_v11, %v1141_v10  ;;  %s1969_s12 = smov 29  }
  0x5f   :  { %v1783_v14 = vld [vmem:[%s3453_s0 + $0xf5] sm:$0x8]   ;;  %v1182_v15 = vsel %vm9_vm1, %v1782_v4, %v1178_v3  ;;  %v1788_v17 = vld [vmem:[%s3453_s0 + $0x9c] sm:$0x4]   ;;  %v1792_v18 = vld [vmem:[%s3453_s0 + $0x4] sm:$0x1]   ;;  %v1164_v25 = vsel %vm13_vm2, %v1778_v13, %v1160_v12 }
  0x60   :  { %v1793_v19 = vld [vmem:[%s3453_s0 + $0x43] sm:$0x2]   ;;  %v1797_v23 = vld [vmem:[%s3453_s0 + $0x37] sm:$0x1]   ;;  %v1779_v26 = vld [vmem:[%s3453_s0 + $0x101] sm:$0x10]   ;;  %v1186_v28 = vsel %vm13_vm2, %v1783_v14, %v1182_v15  ;;  %v1205_v30 = vsel %vm9_vm1, %v1788_v17, %v1201_v16 }
  0x61   :  { %1033 = vrot.lane.b32.xlu0 %v1032_v47, %s1965_s26  ;;  %s1968_s26 = smov 30   ;;  %v1224_v21 = vsel %vm5_vm0, %v1793_v19, %v1792_v18  ;;  %v1794_v22 = vld [vmem:[%s3453_s0 + $0x82] sm:$0x4]   ;;  %v1798_v27 = vld [vmem:[%s3453_s0 + $0x76] sm:$0x2]   ;;  %v1168_v38 = vsel %vm17_vm3, %v1779_v26, %v1164_v25  ;;  %s1971_s7 = smov 25  }
  0x62   :  { %1101 = vrot.lane.b32.xlu1 %v1100_v5, %s1968_s26  ;;  %v1784_v29 = vld [vmem:[%s3453_s0 + $0x134] sm:$0x10]   ;;  %v1789_v31 = vld [vmem:[%s3453_s0 + $0xdb] sm:$0x8]   ;;  %v1803_v32 = vld [vmem:[%s3453_s0 + $0x1d] sm:$0x1]   ;;  %v1228_v33 = vsel %vm9_vm1, %v1794_v22, %v1224_v21  ;;  %v1246_v35 = vsel %vm5_vm0, %v1798_v27, %v1797_v23 }
  0x63   :  { %v1795_v34 = vld [vmem:[%s3453_s0 + $0xc1] sm:$0x8]   ;;  %v1799_v36 = vld [vmem:[%s3453_s0 + $0xb5] sm:$0x4]   ;;  %v1804_v37 = vld [vmem:[%s3453_s0 + $0x5c] sm:$0x2]   ;;  %v1190_v43 = vsel %vm17_vm3, %v1784_v29, %v1186_v28  ;;  %v1209_v44 = vsel %vm13_vm2, %v1789_v31, %v1205_v30 }
  0x64   :  { %v1269_v39 = vsel %vm5_vm0, %v1804_v37, %v1803_v32  ;;  %v1805_v40 = vld [vmem:[%s3453_s0 + $0x9b] sm:$0x4]   ;;  %v1809_v41 = vld [vmem:[%s3453_s0 + $0x3] sm:$0x1]   ;;  %v1790_v45 = vld [vmem:[%s3453_s0 + $0x11a] sm:$0x10]   ;;  %v1232_v47 = vsel %vm13_vm2, %v1795_v34, %v1228_v33  ;;  %v1250_v48 = vsel %vm9_vm1, %v1799_v36, %v1246_v35 }
  0x65   :  { %1078 = vrot.lane.b32.xlu0 %v1077_v2, %s1967_s19  ;;  %s1970_s19 = smov 27   ;;  %v1810_v42 = vld [vmem:[%s3453_s0 + $0x42] sm:$0x2]   ;;  %v1796_v46 = vld [vmem:[%s3453_s0 + $0x100] sm:$0x10]   ;;  %v1273_v52 = vsel %vm9_vm1, %v1805_v40, %v1269_v39  ;;  %v1213_v56 = vsel %vm17_vm3, %v1790_v45, %v1209_v44  ;;  %s1973_s29 = smov 22  }
  0x66   :  { %1146 = vrot.lane.b32.xlu1 %v1145_v24, %s1970_s19  ;;  %v1800_v49 = vld [vmem:[%s3453_s0 + $0xf4] sm:$0x8]   ;;  %v1814_v50 = vld [vmem:[%s3453_s0 + $0x36] sm:$0x1]   ;;  %v1806_v53 = vld [vmem:[%s3453_s0 + $0xda] sm:$0x8]   ;;  %v1292_v54 = vsel %vm5_vm0, %v1810_v42, %v1809_v41  ;;  %v1236_v61 = vsel %vm17_vm3, %v1796_v46, %v1232_v47 }
  0x67   :  { %v1815_v51 = vld [vmem:[%s3453_s0 + $0x75] sm:$0x2]   ;;  %v1811_v55 = vld [vmem:[%s3453_s0 + $0x81] sm:$0x4]   ;;  %v1820_v59 = vld [vmem:[%s3453_s0 + $0x1c] sm:$0x1]   ;;  %v1254_v62 = vsel %vm13_vm2, %v1800_v49, %v1250_v48  ;;  %v1277_v1 = vsel %vm13_vm2, %v1806_v53, %v1273_v52 }
  0x68   :  { %v1314_v57 = vsel %vm5_vm0, %v1815_v51, %v1814_v50  ;;  %v1816_v58 = vld [vmem:[%s3453_s0 + $0xb4] sm:$0x4]   ;;  %v1821_v60 = vld [vmem:[%s3453_s0 + $0x5b] sm:$0x2]   ;;  %v1801_v63 = vld [vmem:[%s3453_s0 + $0x133] sm:$0x10]   ;;  %v1296_v2 = vsel %vm9_vm1, %v1811_v55, %v1292_v54 }
  0x69   :  { %1123 = vrot.lane.b32.xlu0 %v1122_v20, %s1969_s12  ;;  %s1972_s12 = smov 24   ;;  %v1807_v0 = vld [vmem:[%s3453_s0 + $0x119] sm:$0x10]   ;;  %v1812_v3 = vld [vmem:[%s3453_s0 + $0xc0] sm:$0x8]   ;;  %v1318_v7 = vsel %vm9_vm1, %v1816_v58, %v1314_v57  ;;  %v1337_v9 = vsel %vm5_vm0, %v1821_v60, %v1820_v59  ;;  %v1258_v11 = vsel %vm17_vm3, %v1801_v63, %v1254_v62  ;;  %s1975_s26 = smov 19  }
  0x6a   :  { %1191 = vrot.lane.b32.xlu1 %v1190_v43, %s1972_s12  ;;  %v1826_v4 = vld [vmem:[%s3453_s0 + $0x2] sm:$0x1]   ;;  %v1813_v6 = vld [vmem:[%s3453_s0 + $0xff] sm:$0x10]   ;;  %v1817_v8 = vld [vmem:[%s3453_s0 + $0xf3] sm:$0x8]   ;;  %v1281_v16 = vsel %vm17_vm3, %v1807_v0, %v1277_v1  ;;  %v1300_v17 = vsel %vm13_vm2, %v1812_v3, %v1296_v2 }
  0x6b   :  { %v1827_v5 = vld [vmem:[%s3453_s0 + $0x41] sm:$0x2]   ;;  %v1822_v10 = vld [vmem:[%s3453_s0 + $0x9a] sm:$0x4]   ;;  %v1831_v14 = vld [vmem:[%s3453_s0 + $0x35] sm:$0x1]   ;;  %v1322_v21 = vsel %vm13_vm2, %v1817_v8, %v1318_v7  ;;  %v1304_v31 = vsel %vm17_vm3, %v1813_v6, %v1300_v17 }
  0x6c   :  { %v1360_v12 = vsel %vm5_vm0, %v1827_v5, %v1826_v4  ;;  %v1828_v13 = vld [vmem:[%s3453_s0 + $0x80] sm:$0x4]   ;;  %v1832_v15 = vld [vmem:[%s3453_s0 + $0x74] sm:$0x2]   ;;  %v1818_v18 = vld [vmem:[%s3453_s0 + $0x132] sm:$0x10]   ;;  %v1341_v22 = vsel %vm9_vm1, %v1822_v10, %v1337_v9 }
  0x6d   :  { %1169 = vrot.lane.b32.xlu0 %v1168_v38, %s1971_s7  ;;  %s1974_s7 = smov 20   ;;  %v1823_v19 = vld [vmem:[%s3453_s0 + $0xd9] sm:$0x8]   ;;  %v1829_v20 = vld [vmem:[%s3453_s0 + $0xbf] sm:$0x8]   ;;  %v1364_v26 = vsel %vm9_vm1, %v1828_v13, %v1360_v12  ;;  %v1382_v27 = vsel %vm5_vm0, %v1832_v15, %v1831_v14  ;;  %vm19_vm6 = vcmask 39936   ;;  %v1326_v36 = vsel %vm17_vm3, %v1818_v18, %v1322_v21 }
  0x6e   :  { %1237 = vrot.lane.b32.xlu1 %v1236_v61, %s1974_s7  ;;  %v1833_v23 = vld [vmem:[%s3453_s0 + $0xb3] sm:$0x4]   ;;  %v2_v24 = vld [vmem:[%s3453_s0] sm:$0x1]   ;;  %s1976_s2 = smov 17   ;;  %v1345_v37 = vsel %vm13_vm2, %v1823_v19, %v1341_v22  ;;  %v1368_v43 = vsel %vm13_vm2, %v1829_v20, %v1364_v26  ;;  %s1977_s21 = smov 15  }
  0x6f   :  { %v1491_v25 = vld [vmem:[%s3453_s0 + $0x3f] sm:$0x2]   ;;  %v1837_v34 = vld [vmem:[%s3453_s0 + $0x1b] sm:$0x1]   ;;  %v1824_v38 = vld [vmem:[%s3453_s0 + $0x118] sm:$0x10]   ;;  %v1386_v44 = vsel %vm9_vm1, %v1833_v23, %v1382_v27 }
  0x70   :  { %v6_v28 = vsel %vm5_vm0, %v1491_v25, %v2_v24  ;;  %v1492_v29 = vld [vmem:[%s3453_s0 + $0x7e] sm:$0x4]   ;;  %v1838_v35 = vld [vmem:[%s3453_s0 + $0x5a] sm:$0x2]   ;;  %v1830_v39 = vld [vmem:[%s3453_s0 + $0xfe] sm:$0x10]   ;;  %v1349_v53 = vsel %vm17_vm3, %v1824_v38, %v1345_v37 }
  0x71   :  { %1214 = vrot.lane.b32.xlu0 %v1213_v56, %s1973_s29  ;;  %v1493_v30 = vld [vmem:[%s3453_s0 + $0xbd] sm:$0x8]   ;;  %v10_v32 = vsel %vm9_vm1, %v1492_v29, %v6_v28  ;;  %v1405_v41 = vsel %vm5_vm0, %v1838_v35, %v1837_v34  ;;  %v1839_v42 = vld [vmem:[%s3453_s0 + $0x99] sm:$0x4]   ;;  %v1834_v45 = vld [vmem:[%s3453_s0 + $0xf2] sm:$0x8]   ;;  %v1372_v56 = vsel %vm17_vm3, %v1830_v39, %v1368_v43 }
  0x72   :  { %1282 = vrot.lane.b32.xlu1 %v1281_v16, %s1976_s2  ;;  %v1494_v33 = vld [vmem:[%s3453_s0 + $0xfc] sm:$0x10]   ;;  %v14_v40 = vsel %vm13_vm2, %v1493_v30, %v10_v32  ;;  %v1843_v47 = vld [vmem:[%s3453_s0 + $0x1] sm:$0x1]   ;;  %vm61_vm7 = vcmask 31744   ;;  %v1409_v49 = vsel %vm9_vm1, %v1839_v42, %v1405_v41  ;;  %s1978_s28 = smov 14   ;;  %v1390_v57 = vsel %vm13_vm2, %v1834_v45, %v1386_v44 }
  0x73   :  { %v18_v46 = vsel %vm17_vm3, %v1494_v33, %v14_v40  ;;  %v1844_v48 = vld [vmem:[%s3453_s0 + $0x40] sm:$0x2]   ;;  %v1840_v50 = vld [vmem:[%s3453_s0 + $0xd8] sm:$0x8]   ;;  %vm64_vm8 = vcmask 1048568   ;;  %s1979_s16 = smov 12  }
  0x74   :  { %20 = vst.msk [vmem:[%s3454_s1] sm:$0x1f] %vm19_vm6, %v18_v46   ;;  %v1428_v51 = vsel %vm5_vm0, %v1844_v48, %v1843_v47  ;;  %v1845_v52 = vld [vmem:[%s3453_s0 + $0x7f] sm:$0x4]   ;;  %v1848_v54 = vld [vmem:[%s3453_s0 + $0x34] sm:$0x1]   ;;  %v1413_v62 = vsel %vm13_vm2, %v1840_v50, %v1409_v49 }
  0x75   :  { %1259 = vrot.lane.b32.xlu0 %v1258_v11, %s1975_s26  ;;  %v1849_v55 = vld [vmem:[%s3453_s0 + $0x73] sm:$0x2]   ;;  %v1835_v58 = vld [vmem:[%s3453_s0 + $0x131] sm:$0x10]   ;;  %v1841_v59 = vld [vmem:[%s3453_s0 + $0x117] sm:$0x10]   ;;  %v1432_v63 = vsel %vm9_vm1, %v1845_v52, %v1428_v51 }
  0x76   :  { %1327 = vrot.lane.b32.xlu1 %v1326_v36, %s1978_s28  ;;  %v1450_v60 = vsel %vm5_vm0, %v1849_v55, %v1848_v54  ;;  %v1850_v61 = vld [vmem:[%s3453_s0 + $0xb2] sm:$0x4]   ;;  %v1846_v0 = vld [vmem:[%s3453_s0 + $0xbe] sm:$0x8]   ;;  %v1854_v1 = vld [vmem:[%s3453_s0 + $0x1a] sm:$0x1]   ;;  %v1394_v8 = vsel %vm17_vm3, %v1835_v58, %v1390_v57  ;;  %v1417_v10 = vsel %vm17_vm3, %v1841_v59, %v1413_v62 }
  0x77   :  { %v1855_v2 = vld [vmem:[%s3453_s0 + $0x59] sm:$0x2]   ;;  %v1454_v3 = vsel %vm9_vm1, %v1850_v61, %v1450_v60  ;;  %v1851_v4 = vld [vmem:[%s3453_s0 + $0xf1] sm:$0x8]   ;;  %v1436_v11 = vsel %vm13_vm2, %v1846_v0, %v1432_v63  ;;  %v1847_v12 = vld [vmem:[%s3453_s0 + $0xfd] sm:$0x10]  }
  0x78   :  { %v1473_v5 = vsel %vm5_vm0, %v1855_v2, %v1854_v1  ;;  %v1856_v6 = vld [vmem:[%s3453_s0 + $0x98] sm:$0x4]   ;;  %v1458_v13 = vsel %vm13_vm2, %v1851_v4, %v1454_v3  ;;  %v1852_v14 = vld [vmem:[%s3453_s0 + $0x130] sm:$0x10]   ;;  %s1981_s3 = smov 9   ;;  %vm107_vm9 = vcmask 15360   ;;  %v1440_v17 = vsel %vm17_vm3, %v1847_v12, %v1436_v11 }
  0x79   :  { %1305 = vrot.lane.b32.xlu0 %v1304_v31, %s1977_s21  ;;  %s1980_s21 = smov 10   ;;  %v131_v9 = vpop.permute.xlu1 %130   ;;  %v1477_v15 = vsel %vm9_vm1, %v1856_v6, %v1473_v5  ;;  %v1857_v16 = vld [vmem:[%s3453_s0 + $0xd7] sm:$0x8]   ;;  %vm110_vm10 = vcmask 1048552   ;;  %vm132_vm11 = vcmask 1040336   ;;  %s1982_s4 = smov 7   ;;  %v1462_v19 = vsel %vm17_vm3, %v1852_v14, %v1458_v13 }
  0x7a   :  { %1373 = vrot.lane.b32.xlu1 %v1372_v56, %s1980_s21  ;;  %vm155_vm12 = vcmask 1023936   ;;  %v1481_v20 = vsel %vm13_vm2, %v1857_v16, %v1477_v15  ;;  %v1858_v21 = vld [vmem:[%s3453_s0 + $0x116] sm:$0x10]   ;;  %s1983_s12 = smov 5   ;;  %vm177_vm13 = vcmask 999336   ;;  %s1984_s15 = smov 4  }
  0x7b   :  { %v1485_v23 = vsel %vm17_vm3, %v1858_v21, %v1481_v20  ;;  %vm200_vm14 = vcmask 982936   ;;  %s1985_s18 = smov 2   ;;  %vm222_vm15 = vcmask 958336   ;;  %vm245_vm0 = vcmask 941936  }
  0x7c   :  { %vm267_vm1 = vcmask 917336   ;;  %vm290_vm2 = vcmask 900936   ;;  %vm312_vm3 = vcmask 876336   ;;  %vm335_vm4 = vcmask 859936  }
  0x7d   :  { %1350 = vrot.lane.b32.xlu0 %v1349_v53, %s1979_s16  ;;  %vm357_vm5 = vcmask 835336   ;;  %vm380_vm6 = vcmask 818936  }
  0x7e   :  { %1418 = vrot.lane.b32.xlu1 %v1417_v10, %s1982_s4 }
  0x7f   :  { %v60_v7 = vpop.permute.xlu0 %59   ;;  %v154_v22 = vpop.permute.xlu1 %153  }
  0x80   :  { %1505 = vst.msk [vmem:[%s3454_s1 + $0x10] sm:$0x1f] %vm61_vm7, %v60_v7   ;;  %vm402_vm7 = vcmask 794336  }
  0x81   :  { %1506 = vst.msk [vmem:[%s3454_s1 + $0x8] sm:$0x1f] %vm64_vm8, %v60_v7   ;;  %1395 = vrot.lane.b32.xlu0 %v1394_v8, %s1981_s3  ;;  %vm425_vm8 = vcmask 777936  }
  0x82   :  { %1463 = vrot.lane.b32.xlu1 %v1462_v19, %s1984_s15 }
  0x83   :  { %v106_v18 = vpop.permute.xlu0 %105   ;;  %v199_v25 = vpop.permute.xlu1 %198  }
  0x84   :  { %1517 = vst.msk [vmem:[%s3454_s1 + $0x8] sm:$0x1f] %vm107_vm9, %v106_v18   ;;  %vm447_vm9 = vcmask 753336  }
  0x85   :  { %111 = vst.msk [vmem:[%s3454_s1] sm:$0x1f] %vm110_vm10, %v106_v18   ;;  %1441 = vrot.lane.b32.xlu0 %v1440_v17, %s1983_s12  ;;  %vm470_vm10 = vcmask 736936  }
  0x86   :  { %1523 = vst.msk [vmem:[%s3454_s1 + $0x8] sm:$0x1f] %vm132_vm11, %v131_v9   ;;  %vm492_vm11 = vcmask 712336  }
  0x87   :  { %156 = vst.msk [vmem:[%s3454_s1] sm:$0x1f] %vm155_vm12, %v154_v22   ;;  %v176_v24 = vpop.permute.xlu0 %175   ;;  %vm515_vm12 = vcmask 695936  }
  0x88   :  { %1534 = vst.msk [vmem:[%s3454_s1 + $0x8] sm:$0x1f] %vm177_vm13, %v176_v24   ;;  %v244_v27 = vpop.permute.xlu1 %243   ;;  %vm537_vm13 = vcmask 671336  }
  0x89   :  { %1486 = vrot.lane.b32.xlu0 %v1485_v23, %s1985_s18  ;;  %201 = vst.msk [vmem:[%s3454_s1] sm:$0x1f] %vm200_vm14, %v199_v25   ;;  %vm560_vm14 = vcmask 654936  }
  0x8a   :  { %246 = vst.msk [vmem:[%s3454_s1] sm:$0x1f] %vm245_vm0, %v244_v27   ;;  %vm605_vm0 = vcmask 613936  }
  0x8b   :  { %v221_v26 = vpop.permute.xlu0 %220  }
  0x8c   :  { %1545 = vst.msk [vmem:[%s3454_s1 + $0x8] sm:$0x1f] %vm222_vm15, %v221_v26   ;;  %v289_v29 = vpop.permute.xlu1 %288   ;;  %vm582_vm15 = vcmask 630336  }
  0x8d   :  { %291 = vst.msk [vmem:[%s3454_s1] sm:$0x1f] %vm290_vm2, %v289_v29   ;;  %vm650_vm2 = vcmask 572936  }
  0x8f   :  { %v266_v28 = vpop.permute.xlu0 %265  }
  0x90   :  { %1556 = vst.msk [vmem:[%s3454_s1 + $0x8] sm:$0x1f] %vm267_vm1, %v266_v28   ;;  %v334_v31 = vpop.permute.xlu1 %333   ;;  %vm627_vm1 = vcmask 589336  }
  0x91   :  { %336 = vst.msk [vmem:[%s3454_s1] sm:$0x1f] %vm335_vm4, %v334_v31   ;;  %vm695_vm4 = vcmask 531936  }
  0x93   :  { %v311_v30 = vpop.permute.xlu0 %310  }
  0x94   :  { %1567 = vst.msk [vmem:[%s3454_s1 + $0x8] sm:$0x1f] %vm312_vm3, %v311_v30   ;;  %v379_v33 = vpop.permute.xlu1 %378   ;;  %vm672_vm3 = vcmask 548336  }
  0x95   :  { %381 = vst.msk [vmem:[%s3454_s1] sm:$0x1f] %vm380_vm6, %v379_v33   ;;  %vm740_vm6 = vcmask 507336  }
  0x97   :  { %v356_v32 = vpop.permute.xlu0 %355  }
  0x98   :  { %1578 = vst.msk [vmem:[%s3454_s1 + $0x8] sm:$0x1f] %vm357_vm5, %v356_v32   ;;  %v424_v35 = vpop.permute.xlu1 %423   ;;  %vm717_vm5 = vcmask 523736  }
  0x99   :  { %426 = vst.msk [vmem:[%s3454_s1] sm:$0x1f] %vm425_vm8, %v424_v35   ;;  %vm785_vm8 = vcmask 482736  }
  0x9b   :  { %v401_v34 = vpop.permute.xlu0 %400  }
  0x9c   :  { %1589 = vst.msk [vmem:[%s3454_s1 + $0x8] sm:$0x1f] %vm402_vm7, %v401_v34   ;;  %v469_v37 = vpop.permute.xlu1 %468   ;;  %vm763_vm7 = vcmask 490936  }
  0x9d   :  { %471 = vst.msk [vmem:[%s3454_s1] sm:$0x1f] %vm470_vm10, %v469_v37   ;;  %vm831_vm10 = vcmask 449936  }
  0x9f   :  { %v446_v36 = vpop.permute.xlu0 %445  }
  0xa0   :  { %1600 = vst.msk [vmem:[%s3454_s1 + $0x8] sm:$0x1f] %vm447_vm9, %v446_v36   ;;  %v514_v39 = vpop.permute.xlu1 %513   ;;  %vm808_vm9 = vcmask 466336  }
  0xa1   :  { %516 = vst.msk [vmem:[%s3454_s1] sm:$0x1f] %vm515_vm12, %v514_v39   ;;  %vm876_vm12 = vcmask 425336  }
  0xa3   :  { %v491_v38 = vpop.permute.xlu0 %490  }
  0xa4   :  { %1611 = vst.msk [vmem:[%s3454_s1 + $0x8] sm:$0x1f] %vm492_vm11, %v491_v38   ;;  %v559_v41 = vpop.permute.xlu1 %558   ;;  %vm853_vm11 = vcmask 441736  }
  0xa5   :  { %561 = vst.msk [vmem:[%s3454_s1] sm:$0x1f] %vm560_vm14, %v559_v41   ;;  %vm921_vm14 = vcmask 400736  }
  0xa7   :  { %v536_v40 = vpop.permute.xlu0 %535  }
  0xa8   :  { %1622 = vst.msk [vmem:[%s3454_s1 + $0x8] sm:$0x1f] %vm537_vm13, %v536_v40   ;;  %v604_v43 = vpop.permute.xlu1 %603   ;;  %vm899_vm13 = vcmask 408936  }
  0xa9   :  { %606 = vst.msk [vmem:[%s3454_s1] sm:$0x1f] %vm605_vm0, %v604_v43   ;;  %vm967_vm0 = vcmask 367936  }
  0xab   :  { %v581_v42 = vpop.permute.xlu0 %580  }
  0xac   :  { %1633 = vst.msk [vmem:[%s3454_s1 + $0x8] sm:$0x1f] %vm582_vm15, %v581_v42   ;;  %v649_v45 = vpop.permute.xlu1 %648   ;;  %vm944_vm15 = vcmask 384336  }
  0xad   :  { %651 = vst.msk [vmem:[%s3454_s1] sm:$0x1f] %vm650_vm2, %v649_v45   ;;  %vm1012_vm2 = vcmask 343336  }
  0xaf   :  { %v626_v44 = vpop.permute.xlu0 %625  }
  0xb0   :  { %1644 = vst.msk [vmem:[%s3454_s1 + $0x8] sm:$0x1f] %vm627_vm1, %v626_v44   ;;  %v694_v47 = vpop.permute.xlu1 %693   ;;  %vm989_vm1 = vcmask 359736  }
  0xb1   :  { %696 = vst.msk [vmem:[%s3454_s1] sm:$0x1f] %vm695_vm4, %v694_v47   ;;  %vm1057_vm4 = vcmask 318736  }
  0xb3   :  { %v671_v46 = vpop.permute.xlu0 %670  }
  0xb4   :  { %1655 = vst.msk [vmem:[%s3454_s1 + $0x8] sm:$0x1f] %vm672_vm3, %v671_v46   ;;  %v739_v49 = vpop.permute.xlu1 %738   ;;  %vm1035_vm3 = vcmask 326936  }
  0xb5   :  { %1672 = vst.msk [vmem:[%s3454_s1 + $0x8] sm:$0x1f] %vm740_vm6, %v739_v49   ;;  %vm1103_vm6 = vcmask 285936  }
  0xb7   :  { %v716_v48 = vpop.permute.xlu0 %715  }
  0xb8   :  { %1666 = vst.msk [vmem:[%s3454_s1 + $0x10] sm:$0x1f] %vm717_vm5, %v716_v48   ;;  %v784_v51 = vpop.permute.xlu1 %783   ;;  %vm1080_vm5 = vcmask 302336  }
  0xb9   :  { %1683 = vst.msk [vmem:[%s3454_s1 + $0x10] sm:$0x1f] %vm785_vm8, %v784_v51   ;;  %vm1148_vm8 = vcmask 261336  }
  0xbb   :  { %v762_v50 = vpop.permute.xlu0 %761  }
  0xbc   :  { %764 = vst.msk [vmem:[%s3454_s1] sm:$0x1f] %vm763_vm7, %v762_v50   ;;  %v830_v53 = vpop.permute.xlu1 %829   ;;  %vm1125_vm7 = vcmask 277736  }
  0xbd   :  { %832 = vst.msk [vmem:[%s3454_s1] sm:$0x1f] %vm831_vm10, %v830_v53   ;;  %vm1193_vm10 = vcmask 236736  }
  0xbf   :  { %v807_v52 = vpop.permute.xlu0 %806  }
  0xc0   :  { %1689 = vst.msk [vmem:[%s3454_s1 + $0x8] sm:$0x1f] %vm808_vm9, %v807_v52   ;;  %v875_v55 = vpop.permute.xlu1 %874   ;;  %vm1171_vm9 = vcmask 244936  }
  0xc1   :  { %1706 = vst.msk [vmem:[%s3454_s1 + $0x8] sm:$0x1f] %vm876_vm12, %v875_v55   ;;  %vm1239_vm12 = vcmask 203936  }
  0xc3   :  { %v852_v54 = vpop.permute.xlu0 %851  }
  0xc4   :  { %1700 = vst.msk [vmem:[%s3454_s1 + $0x10] sm:$0x1f] %vm853_vm11, %v852_v54   ;;  %v920_v57 = vpop.permute.xlu1 %919   ;;  %vm1216_vm11 = vcmask 220336  }
  0xc5   :  { %1717 = vst.msk [vmem:[%s3454_s1 + $0x10] sm:$0x1f] %vm921_vm14, %v920_v57   ;;  %vm1284_vm14 = vcmask 179336  }
  0xc7   :  { %v898_v56 = vpop.permute.xlu0 %897  }
  0xc8   :  { %900 = vst.msk [vmem:[%s3454_s1] sm:$0x1f] %vm899_vm13, %v898_v56   ;;  %v966_v59 = vpop.permute.xlu1 %965   ;;  %vm1261_vm13 = vcmask 195736  }
  0xc9   :  { %968 = vst.msk [vmem:[%s3454_s1] sm:$0x1f] %vm967_vm0, %v966_v59   ;;  %vm1329_vm0 = vcmask 154736  }
  0xcb   :  { %v943_v58 = vpop.permute.xlu0 %942  }
  0xcc   :  { %1723 = vst.msk [vmem:[%s3454_s1 + $0x8] sm:$0x1f] %vm944_vm15, %v943_v58   ;;  %v1011_v61 = vpop.permute.xlu1 %1010   ;;  %vm1307_vm15 = vcmask 162936  }
  0xcd   :  { %1740 = vst.msk [vmem:[%s3454_s1 + $0x8] sm:$0x1f] %vm1012_vm2, %v1011_v61   ;;  %vm1375_vm2 = vcmask 121936  }
  0xcf   :  { %v988_v60 = vpop.permute.xlu0 %987  }
  0xd0   :  { %1734 = vst.msk [vmem:[%s3454_s1 + $0x10] sm:$0x1f] %vm989_vm1, %v988_v60   ;;  %v1056_v63 = vpop.permute.xlu1 %1055   ;;  %vm1352_vm1 = vcmask 138336  }
  0xd1   :  { %1751 = vst.msk [vmem:[%s3454_s1 + $0x10] sm:$0x1f] %vm1057_vm4, %v1056_v63   ;;  %vm1420_vm4 = vcmask 97336  }
  0xd3   :  { %v1034_v62 = vpop.permute.xlu0 %1033  }
  0xd4   :  { %1036 = vst.msk [vmem:[%s3454_s1] sm:$0x1f] %vm1035_vm3, %v1034_v62   ;;  %v1102_v1 = vpop.permute.xlu1 %1101   ;;  %vm1397_vm3 = vcmask 113736  }
  0xd5   :  { %1104 = vst.msk [vmem:[%s3454_s1] sm:$0x1f] %vm1103_vm6, %v1102_v1   ;;  %vm1465_vm6 = vcmask 72736  }
  0xd7   :  { %v1079_v0 = vpop.permute.xlu0 %1078  }
  0xd8   :  { %1757 = vst.msk [vmem:[%s3454_s1 + $0x8] sm:$0x1f] %vm1080_vm5, %v1079_v0   ;;  %v1147_v3 = vpop.permute.xlu1 %1146   ;;  %vm1443_vm5 = vcmask 80936  }
  0xd9   :  { %1774 = vst.msk [vmem:[%s3454_s1 + $0x8] sm:$0x1f] %vm1148_vm8, %v1147_v3  }
  0xdb   :  { %v1124_v2 = vpop.permute.xlu0 %1123  }
  0xdc   :  { %1768 = vst.msk [vmem:[%s3454_s1 + $0x10] sm:$0x1f] %vm1125_vm7, %v1124_v2   ;;  %v1192_v5 = vpop.permute.xlu1 %1191   ;;  %vm1488_vm7 = vcmask 56336  }
  0xdd   :  { %1785 = vst.msk [vmem:[%s3454_s1 + $0x10] sm:$0x1f] %vm1193_vm10, %v1192_v5  }
  0xdf   :  { %v1170_v4 = vpop.permute.xlu0 %1169  }
  0xe0   :  { %1172 = vst.msk [vmem:[%s3454_s1] sm:$0x1f] %vm1171_vm9, %v1170_v4   ;;  %v1238_v7 = vpop.permute.xlu1 %1237  }
  0xe1   :  { %1240 = vst.msk [vmem:[%s3454_s1] sm:$0x1f] %vm1239_vm12, %v1238_v7  }
  0xe3   :  { %v1215_v6 = vpop.permute.xlu0 %1214  }
  0xe4   :  { %1791 = vst.msk [vmem:[%s3454_s1 + $0x8] sm:$0x1f] %vm1216_vm11, %v1215_v6   ;;  %v1283_v9 = vpop.permute.xlu1 %1282  }
  0xe5   :  { %1808 = vst.msk [vmem:[%s3454_s1 + $0x8] sm:$0x1f] %vm1284_vm14, %v1283_v9  }
  0xe7   :  { %v1260_v8 = vpop.permute.xlu0 %1259  }
  0xe8   :  { %1802 = vst.msk [vmem:[%s3454_s1 + $0x10] sm:$0x1f] %vm1261_vm13, %v1260_v8   ;;  %v1328_v11 = vpop.permute.xlu1 %1327  }
  0xe9   :  { %1819 = vst.msk [vmem:[%s3454_s1 + $0x10] sm:$0x1f] %vm1329_vm0, %v1328_v11  }
  0xeb   :  { %v1306_v10 = vpop.permute.xlu0 %1305  }
  0xec   :  { %1308 = vst.msk [vmem:[%s3454_s1] sm:$0x1f] %vm1307_vm15, %v1306_v10   ;;  %v1374_v13 = vpop.permute.xlu1 %1373  }
  0xed   :  { %1376 = vst.msk [vmem:[%s3454_s1] sm:$0x1f] %vm1375_vm2, %v1374_v13  }
  0xef   :  { %v1351_v12 = vpop.permute.xlu0 %1350  }
  0xf0   :  { %1825 = vst.msk [vmem:[%s3454_s1 + $0x8] sm:$0x1f] %vm1352_vm1, %v1351_v12   ;;  %v1419_v15 = vpop.permute.xlu1 %1418  }
  0xf1   :  { %1842 = vst.msk [vmem:[%s3454_s1 + $0x8] sm:$0x1f] %vm1420_vm4, %v1419_v15  }
  0xf3   :  { %v1396_v14 = vpop.permute.xlu0 %1395  }
  0xf4   :  { %1836 = vst.msk [vmem:[%s3454_s1 + $0x10] sm:$0x1f] %vm1397_vm3, %v1396_v14   ;;  %v1464_v17 = vpop.permute.xlu1 %1463  }
  0xf5   :  { %1853 = vst.msk [vmem:[%s3454_s1 + $0x10] sm:$0x1f] %vm1465_vm6, %v1464_v17  }
  0xf7   :  { %v1442_v16 = vpop.permute.xlu0 %1441  }
  0xf8   :  { %1444 = vst.msk [vmem:[%s3454_s1] sm:$0x1f] %vm1443_vm5, %v1442_v16  }
  0xfb   :  { %v1487_v18 = vpop.permute.xlu0 %1486  }
  0xfc   :  { %1859 = vst.msk [vmem:[%s3454_s1 + $0x8] sm:$0x1f] %vm1488_vm7, %v1487_v18  }

// kernel: duq_forward.1
= control target key start
LH: loop header
LB: loop body
LE: loop exit
PB: predicated region body
PF: predicated region fallthrough
CT: control target
= control target key end

     0   :  { %s1856_s18 = smov 0   ;;  %s2540_s0 = inlined_call_operand.vmem [shape: f32[256,256], index: 0, kind: input, shape index: {}]   ;;  %s2541_s1 = inlined_call_operand.vmem [shape: f32[256,320], index: 1, kind: input, shape index: {}]   ;;  %s2542_s2 = inlined_call_operand.vmem [shape: f32[1,320], index: 2, kind: input, shape index: {}]   ;;  %s2543_s3 = inlined_call_operand.vmem [shape: f32[320,5], index: 3, kind: input, shape index: {}]   ;;  %s2544_s4 = inlined_call_operand.vmem [shape: f32[256,320], index: 4, kind: output, shape index: {0}]   ;;  %s2545_s5 = inlined_call_operand.vmem [shape: f32[256,5], index: 5, kind: output, shape index: {1}]  }
   0x1 LB: > { %s1378_s19 = sadd.s32 4294967295, %s1824_s18   ;;  %p1382_p0 = scmp.ge.s32.totalorder %s1824_s18, 1  ;;  %s1824_s18 = sphi %s1856_s18, %s16_s18  }
   0x2   : > { %p192_p1 = scmp.lt.s32.totalorder %s1824_s18, 3 }
   0x4   : > { %p193_p2 = pnand %p1382_p0, %p192_p1 }
   0x5   : > { %v280_v0 = vld [vmem:[%s2541_s1 + $0x8] sm:$0xff] (!%p193_p2)  ;;  %v283_v1 = vld [vmem:[%s2541_s1 + $0x20] sm:$0xff] (!%p193_p2)  ;;  %v282_v4 = vld [vmem:[%s2541_s1 + $0x18] sm:$0xff] (!%p193_p2)  ;;  %s1956_s9 = sshll.u32 (!%p193_p2), %s1378_s19, 4  ;;  %vm683_vm0 = vcmask (!%p193_p2), 523264   ;;  %vm1269_vm1 = vcmask (!%p193_p2), 39936  }
   0x6   : > { %196 = sbr.rel (%p193_p2) target bundleno = 583 (0x247), region = 36  ;;  %v279_v2 = vld [vmem:[%s2541_s1] sm:$0xff] (!%p193_p2)  ;;  %v1633_v3 = vpack.c.bf16 (!%p193_p2), %v283_v1, %v280_v0  ;;  %v286_v5 = vld [vmem:[%s2541_s1 + $0x38] sm:$0xff] (!%p193_p2)  ;;  %v289_v6 = vld [vmem:[%s2541_s1 + $0x50] sm:$0xff] (!%p193_p2)  ;;  %p228_p3 = scmp.lt.s32.totalorder (!%p193_p2), %s1956_s9, 31 }
   0x7   : > { %v1635_v7 = vpack.c.bf16 (!%p193_p2), %v282_v4, %v279_v2  ;;  %v1637_v8 = vpack.c.bf16 (!%p193_p2), %v289_v6, %v286_v5  ;;  %v285_v9 = vld [vmem:[%s2541_s1 + $0x30] sm:$0xff] (!%p193_p2)  ;;  %v288_v10 = vld [vmem:[%s2541_s1 + $0x48] sm:$0xff] (!%p193_p2)  ;;  %v295_v12 = vld [vmem:[%s2541_s1 + $0x80] sm:$0xff] (!%p193_p2) }
   0x8   : > { %v292_v11 = vld [vmem:[%s2541_s1 + $0x68] sm:$0xff] (!%p193_p2)  ;;  %1634 = vmatprep.subr.bf16.mxu0 (!%p193_p2), %v1633_v3  ;;  %v1639_v13 = vpack.c.bf16 (!%p193_p2), %v288_v10, %v285_v9  ;;  %v291_v15 = vld [vmem:[%s2541_s1 + $0x60] sm:$0xff] (!%p193_p2)  ;;  %v294_v16 = vld [vmem:[%s2541_s1 + $0x78] sm:$0xff] (!%p193_p2) }
   0x9   : > { %1636 = vmatpush1.bf16.msra.mxu0 (!%p193_p2), %v1635_v7  ;;  %v1641_v14 = vpack.c.bf16 (!%p193_p2), %v295_v12, %v292_v11  ;;  %v298_v17 = vld [vmem:[%s2541_s1 + $0x98] sm:$0xff] (!%p193_p2)  ;;  %v301_v18 = vld [vmem:[%s2541_s1 + $0xb0] sm:$0xff] (!%p193_p2)  ;;  %v1643_v19 = vpack.c.bf16 (!%p193_p2), %v294_v16, %v291_v15  ;;  %v300_v22 = vld [vmem:[%s2541_s1 + $0xa8] sm:$0xff] (!%p193_p2) }
   0xa   : > { %1638 = vmatprep.subr.bf16.mxu0 (!%p193_p2), %v1637_v8  ;;  %v1645_v20 = vpack.c.bf16 (!%p193_p2), %v301_v18, %v298_v17  ;;  %v297_v21 = vld [vmem:[%s2541_s1 + $0x90] sm:$0xff] (!%p193_p2)  ;;  %v304_v23 = vld [vmem:[%s2541_s1 + $0xc8] sm:$0xff] (!%p193_p2)  ;;  %v307_v24 = vld [vmem:[%s2541_s1 + $0xe0] sm:$0xff] (!%p193_p2) }
   0xb   : > { %v329_v25 = vld [vmem:[%s2541_s1 + $0x190] sm:$0xff] (!%p193_p2)  ;;  %v332_v26 = vld [vmem:[%s2541_s1 + $0x1a8] sm:$0xff] (!%p193_p2)  ;;  %v1647_v29 = vpack.c.bf16 (!%p193_p2), %v300_v22, %v297_v21  ;;  %v303_v30 = vld [vmem:[%s2541_s1 + $0xc0] sm:$0xff] (!%p193_p2)  ;;  %v1649_v34 = vpack.c.bf16 (!%p193_p2), %v307_v24, %v304_v23 }
   0xc   : > { %v281_v27 = vld [vmem:[%s2541_s1 + $0x10] sm:$0xff] (!%p193_p2)  ;;  %v284_v28 = vld [vmem:[%s2541_s1 + $0x28] sm:$0xff] (!%p193_p2)  ;;  %v306_v31 = vld [vmem:[%s2541_s1 + $0xd8] sm:$0xff] (!%p193_p2)  ;;  %v1697_v32 = vpack.c.bf16 (!%p193_p2), %v332_v26, %v329_v25 }
   0xd   : > { %1640 = vmatpush1.bf16.msra.mxu0 %v1639_v13  ;;  %v1699_v33 = vpack.c.bf16 %v284_v28, %v281_v27  ;;  %v310_v35 = vld [vmem:[%s2541_s1 + $0xf8] sm:$0xff]  ;;  %v335_v36 = vld [vmem:[%s2541_s1 + $0x1c0] sm:$0xff]  ;;  %v313_v38 = vld [vmem:[%s2541_s1 + $0x110] sm:$0xff]  ;;  %v1651_v43 = vpack.c.bf16 %v306_v31, %v303_v30  ;;  %s2547_s9 = smov (!%p228_p3, %s1956_s9), 31 }
   0xe   : > { %1642 = vmatprep.subr.bf16.mxu0 %v1641_v14  ;;  %v338_v37 = vld [vmem:[%s2541_s1 + $0x1d8] sm:$0xff]  ;;  %1698 = vmatprep.subr.bf16.mxu1 %v1697_v32  ;;  %v287_v40 = vld [vmem:[%s2541_s1 + $0x40] sm:$0xff]  ;;  %v341_v44 = vld [vmem:[%s2541_s1 + $0x1f0] sm:$0xff]  ;;  %v1653_v47 = vpack.c.bf16 %v313_v38, %v310_v35  ;;  %s1408_s12 = sshll.u32 %s2547_s9, 4  ;;  %s1777_s25 = smul.u32 24, %s2547_s9 }
   0xf   : > { %v1701_v39 = vpack.c.bf16 %v338_v37, %v335_v36  ;;  %v290_v41 = vld [vmem:[%s2541_s1 + $0x58] sm:$0xff]  ;;  %1700 = vmatpush3.bf16.msra.mxu1 %v1699_v33  ;;  %v344_v45 = vld [vmem:[%s2541_s1 + $0x208] sm:$0xff]  ;;  %v293_v46 = vld [vmem:[%s2541_s1 + $0x70] sm:$0xff]  ;;  %s2055_s26 = scalar_lea.vmem %s2540_s0, %s1408_s12  ;;  %s1389_s7 = sshll.u32 %s2547_s9, 3 }
  0x10   : > { %v1703_v42 = vpack.c.bf16 %v290_v41, %v287_v40  ;;  %v309_v48 = vld [vmem:[%s2541_s1 + $0xf0] sm:$0xff]  ;;  %v312_v49 = vld [vmem:[%s2541_s1 + $0x108] sm:$0xff]  ;;  %v1705_v50 = vpack.c.bf16 %v344_v45, %v341_v44  ;;  %v319_v53 = vld [vmem:[%s2541_s1 + $0x140] sm:$0xff]  ;;  %s2365_s6 = scalar_lea.vmem %s2544_s4, %s1777_s25  ;;  %s2503_s11 = scalar_lea.vmem %s2545_s5, %s1389_s7 }
  0x11   : > { %1644 = vmatpush1.bf16.msra.mxu0 %v1643_v19  ;;  %1702 = vmatprep.subr.bf16.mxu1 %v1701_v39  ;;  %v296_v51 = vld [vmem:[%s2541_s1 + $0x88] sm:$0xff]  ;;  %v347_v54 = vld [vmem:[%s2541_s1 + $0x220] sm:$0xff]  ;;  %v350_v56 = vld [vmem:[%s2541_s1 + $0x238] sm:$0xff]  ;;  %v1655_v57 = vpack.c.bf16 %v312_v49, %v309_v48 }
  0x12   : > { %1646 = vmatprep.subr.bf16.mxu0 %v1645_v20  ;;  %v316_v52 = vld [vmem:[%s2541_s1 + $0x128] sm:$0xff]  ;;  %v1707_v55 = vpack.c.bf16 %v296_v51, %v293_v46  ;;  %v315_v58 = vld [vmem:[%s2541_s1 + $0x120] sm:$0xff]  ;;  %v1709_v59 = vpack.c.bf16 %v350_v56, %v347_v54  ;;  %v302_v61 = vld [vmem:[%s2541_s1 + $0xb8] sm:$0xff] }
  0x13   : > { %1704 = vmatpush3.bf16.msra.mxu1 %v1703_v42  ;;  %v299_v60 = vld [vmem:[%s2541_s1 + $0xa0] sm:$0xff]  ;;  %v1657_v62 = vpack.c.bf16 %v319_v53, %v316_v52  ;;  %v318_v63 = vld [vmem:[%s2541_s1 + $0x138] sm:$0xff]  ;;  %v353_v0 = vld [vmem:[%s2541_s1 + $0x250] sm:$0xff] }
  0x14   : > { %1706 = vmatprep.subr.bf16.mxu1 %v1705_v50  ;;  %v356_v1 = vld [vmem:[%s2541_s1 + $0x268] sm:$0xff]  ;;  %v322_v2 = vld [vmem:[%s2541_s1 + $0x158] sm:$0xff]  ;;  %v325_v3 = vld [vmem:[%s2541_s1 + $0x170] sm:$0xff]  ;;  %v1711_v4 = vpack.c.bf16 %v302_v61, %v299_v60  ;;  %v1659_v5 = vpack.c.bf16 %v318_v63, %v315_v58 }
  0x15   : > { %1648 = vmatpush1.bf16.msra.mxu0 %v1647_v29  ;;  %v321_v6 = vld [vmem:[%s2541_s1 + $0x150] sm:$0xff]  ;;  %v1713_v7 = vpack.c.bf16 %v356_v1, %v353_v0  ;;  %v308_v9 = vld [vmem:[%s2541_s1 + $0xe8] sm:$0xff]  ;;  %v1661_v10 = vpack.c.bf16 %v325_v3, %v322_v2  ;;  %v359_v12 = vld [vmem:[%s2541_s1 + $0x280] sm:$0xff] }
  0x16   : > { %1650 = vmatprep.subr.bf16.mxu0 %v1649_v34  ;;  %v305_v8 = vld [vmem:[%s2541_s1 + $0xd0] sm:$0xff]  ;;  %v324_v11 = vld [vmem:[%s2541_s1 + $0x168] sm:$0xff]  ;;  %v362_v13 = vld [vmem:[%s2541_s1 + $0x298] sm:$0xff] }
  0x17   : > { %1708 = vmatpush3.bf16.msra.mxu1 %v1707_v55  ;;  %v328_v14 = vld [vmem:[%s2541_s1 + $0x188] sm:$0xff]  ;;  %v331_v15 = vld [vmem:[%s2541_s1 + $0x1a0] sm:$0xff]  ;;  %v1715_v16 = vpack.c.bf16 %v308_v9, %v305_v8  ;;  %v1663_v17 = vpack.c.bf16 %v324_v11, %v321_v6  ;;  %v1717_v19 = vpack.c.bf16 %v362_v13, %v359_v12  ;;  %v314_v21 = vld [vmem:[%s2541_s1 + $0x118] sm:$0xff] }
  0x18   : > { %1710 = vmatprep.subr.bf16.mxu1 %v1709_v59  ;;  %v327_v18 = vld [vmem:[%s2541_s1 + $0x180] sm:$0xff]  ;;  %v1665_v22 = vpack.c.bf16 %v331_v15, %v328_v14  ;;  %v330_v23 = vld [vmem:[%s2541_s1 + $0x198] sm:$0xff]  ;;  %v365_v24 = vld [vmem:[%s2541_s1 + $0x2b0] sm:$0xff] }
  0x19   : > { %1652 = vmatpush1.bf16.msra.mxu0 %v1651_v43  ;;  %v311_v20 = vld [vmem:[%s2541_s1 + $0x100] sm:$0xff]  ;;  %v368_v25 = vld [vmem:[%s2541_s1 + $0x2c8] sm:$0xff]  ;;  %v334_v26 = vld [vmem:[%s2541_s1 + $0x1b8] sm:$0xff]  ;;  %v1667_v30 = vpack.c.bf16 %v330_v23, %v327_v18 }
  0x1a   : > { %1654 = vmatprep.subr.bf16.mxu0 %v1653_v47  ;;  %v337_v27 = vld [vmem:[%s2541_s1 + $0x1d0] sm:$0xff]  ;;  %v1719_v28 = vpack.c.bf16 %v314_v21, %v311_v20  ;;  %v248_v29 = vld [vmem:[%s2055_s26 + $0x8] sm:$0xff]  ;;  %v1721_v32 = vpack.c.bf16 %v368_v25, %v365_v24  ;;  %v371_v37 = vld [vmem:[%s2541_s1 + $0x2e0] sm:$0xff] }
  0x1b   : > { %1712 = vmatpush3.bf16.msra.mxu1 %v1711_v4  ;;  %v333_v31 = vld [vmem:[%s2541_s1 + $0x1b0] sm:$0xff]  ;;  %v320_v34 = vld [vmem:[%s2541_s1 + $0x148] sm:$0xff]  ;;  %v1669_v35 = vpack.c.bf16 %v337_v27, %v334_v26  ;;  %v374_v38 = vld [vmem:[%s2541_s1 + $0x2f8] sm:$0xff]  ;;  %600 = vmatprep.mubr.f32.mxu1 %v248_v29 }
  0x1c   : > { %1714 = vmatprep.subr.bf16.mxu1 %v1713_v7  ;;  %v317_v33 = vld [vmem:[%s2541_s1 + $0x130] sm:$0xff]  ;;  %v336_v36 = vld [vmem:[%s2541_s1 + $0x1c8] sm:$0xff]  ;;  %v343_v40 = vld [vmem:[%s2541_s1 + $0x200] sm:$0xff]  ;;  %439 = vmatprep.mubr.f32.mxu0 %v248_v29  ;;  %v1725_v43 = vpack.c.bf16 %v374_v38, %v371_v37 }
  0x1d   : > { %1656 = vmatpush1.bf16.msra.mxu0 %v1655_v57  ;;  %v340_v39 = vld [vmem:[%s2541_s1 + $0x1e8] sm:$0xff]  ;;  %v1723_v41 = vpack.c.bf16 %v320_v34, %v317_v33  ;;  %v1671_v42 = vpack.c.bf16 %v336_v36, %v333_v31  ;;  %v323_v44 = vld [vmem:[%s2541_s1 + $0x160] sm:$0xff]  ;;  %v326_v45 = vld [vmem:[%s2541_s1 + $0x178] sm:$0xff] }
  0x1e   : > { %1658 = vmatprep.subr.bf16.mxu0 %v1657_v62  ;;  %v1673_v46 = vpack.c.bf16 %v343_v40, %v340_v39  ;;  %v339_v47 = vld [vmem:[%s2541_s1 + $0x1e0] sm:$0xff]  ;;  %v342_v48 = vld [vmem:[%s2541_s1 + $0x1f8] sm:$0xff]  ;;  %v349_v50 = vld [vmem:[%s2541_s1 + $0x230] sm:$0xff]  ;;  %v1727_v51 = vpack.c.bf16 %v326_v45, %v323_v44 }
  0x1f   : > { %1716 = vmatpush3.bf16.msra.mxu1 %v1715_v16  ;;  %v346_v49 = vld [vmem:[%s2541_s1 + $0x218] sm:$0xff]  ;;  %v1675_v52 = vpack.c.bf16 %v342_v48, %v339_v47  ;;  %v345_v53 = vld [vmem:[%s2541_s1 + $0x210] sm:$0xff]  ;;  %v348_v55 = vld [vmem:[%s2541_s1 + $0x228] sm:$0xff] }
  0x20   : > { %1718 = vmatprep.subr.bf16.mxu1 %v1717_v19  ;;  %v1677_v54 = vpack.c.bf16 %v349_v50, %v346_v49  ;;  %v352_v56 = vld [vmem:[%s2541_s1 + $0x248] sm:$0xff]  ;;  %v355_v57 = vld [vmem:[%s2541_s1 + $0x260] sm:$0xff]  ;;  %v2131_v59 = vld [vmem:[%s2055_s26 + $0x18] sm:$0xff]  ;;  %v1679_v2 = vpack.c.bf16 %v348_v55, %v345_v53 }
  0x21   : > { %1660 = vmatpush1.bf16.msra.mxu0 %v1659_v5  ;;  %v2128_v58 = vld [vmem:[%s2055_s26] sm:$0xff]  ;;  %v354_v62 = vld [vmem:[%s2541_s1 + $0x258] sm:$0xff]  ;;  %v860_v63 = vld [vmem:[%s2543_s3 + $0x88] sm:$0xff]  ;;  %v1681_v8 = vpack.c.bf16 %v355_v57, %v352_v56 }
  0x22   : > { %1662 = vmatprep.subr.bf16.mxu0 %v1661_v10  ;;  %v859_v60 = vld [vmem:[%s2543_s3 + $0x80] sm:$0xff]  ;;  %v844_v1 = vld [vmem:[%s2543_s3 + $0x8] sm:$0xff]  ;;  %v861_v5 = vld [vmem:[%s2543_s3 + $0x90] sm:$0xff] }
  0x23   : > { %1720 = vmatpush3.bf16.msra.mxu1 %v1719_v28  ;;  %v351_v61 = vld [vmem:[%s2541_s1 + $0x240] sm:$0xff]  ;;  %v1729_v3 = vpack.c.bf16 %v860_v63, %v859_v60  ;;  %v862_v6 = vld [vmem:[%s2543_s3 + $0x98] sm:$0xff]  ;;  %v845_v7 = vld [vmem:[%s2543_s3 + $0x10] sm:$0xff] }
  0x24   : > { %1722 = vmatprep.subr.bf16.mxu1 %v1721_v32  ;;  %v843_v0 = vld [vmem:[%s2543_s3] sm:$0xff]  ;;  %v1733_v9 = vpack.c.bf16 %v862_v6, %v861_v5  ;;  %v846_v10 = vld [vmem:[%s2543_s3 + $0x18] sm:$0xff]  ;;  %v864_v12 = vld [vmem:[%s2543_s3 + $0xa8] sm:$0xff]  ;;  %v1683_v18 = vpack.c.bf16 %v354_v62, %v351_v61 }
  0x25   : > { %1664 = vmatpush1.bf16.msra.mxu0 %v1663_v17  ;;  %v1731_v4 = vpack.c.bf16 %v844_v1, %v843_v0  ;;  %v863_v11 = vld [vmem:[%s2543_s3 + $0xa0] sm:$0xff]  ;;  %v358_v13 = vld [vmem:[%s2541_s1 + $0x278] sm:$0xff]  ;;  %v361_v14 = vld [vmem:[%s2541_s1 + $0x290] sm:$0xff]  ;;  %v1735_v17 = vpack.c.bf16 %v846_v10, %v845_v7 }
  0x26   : > { %1666 = vmatprep.subr.bf16.mxu0 %v1665_v22  ;;  %v357_v15 = vld [vmem:[%s2541_s1 + $0x270] sm:$0xff]  ;;  %v2184_v19 = vld [vmem:[%s2055_s26 + $0x28] sm:$0xff]  ;;  %v1737_v20 = vpack.c.bf16 %v864_v12, %v863_v11  ;;  %v847_v21 = vld [vmem:[%s2543_s3 + $0x20] sm:$0xff]  ;;  %v1685_v23 = vpack.c.bf16 %v361_v14, %v358_v13 }
  0x27   : > { %1724 = vmatpush3.bf16.msra.mxu1 %v1723_v41  ;;  %v2181_v16 = vld [vmem:[%s2055_s26 + $0x10] sm:$0xff]  ;;  %v848_v22 = vld [vmem:[%s2543_s3 + $0x28] sm:$0xff]  ;;  %v866_v26 = vld [vmem:[%s2543_s3 + $0xb8] sm:$0xff] }
  0x28   : > { %1726 = vmatprep.subr.bf16.mxu1 %v1725_v43  ;;  %v360_v24 = vld [vmem:[%s2541_s1 + $0x288] sm:$0xff]  ;;  %v865_v25 = vld [vmem:[%s2543_s3 + $0xb0] sm:$0xff]  ;;  %v367_v28 = vld [vmem:[%s2541_s1 + $0x2c0] sm:$0xff]  ;;  %v1739_v31 = vpack.c.bf16 %v848_v22, %v847_v21 }
  0x29   : > { %1668 = vmatpush1.bf16.msra.mxu0 %v1667_v30  ;;  %v364_v27 = vld [vmem:[%s2541_s1 + $0x2a8] sm:$0xff]  ;;  %v363_v29 = vld [vmem:[%s2541_s1 + $0x2a0] sm:$0xff]  ;;  %v1687_v32 = vpack.c.bf16 %v360_v24, %v357_v15  ;;  %v2216_v33 = vld [vmem:[%s2055_s26 + $0x38] sm:$0xff]  ;;  %v1741_v34 = vpack.c.bf16 %v866_v26, %v865_v25 }
  0x2a   : > { %1670 = vmatprep.subr.bf16.mxu0 %v1669_v35  ;;  %v2213_v30 = vld [vmem:[%s2055_s26 + $0x20] sm:$0xff]  ;;  %v849_v35 = vld [vmem:[%s2543_s3 + $0x30] sm:$0xff]  ;;  %v850_v36 = vld [vmem:[%s2543_s3 + $0x38] sm:$0xff]  ;;  %v1689_v37 = vpack.c.bf16 %v367_v28, %v364_v27 }
  0x2b   : > { %1728 = vmatpush3.bf16.msra.mxu1 %v1727_v51  ;;  %v366_v38 = vld [vmem:[%s2541_s1 + $0x2b8] sm:$0xff]  ;;  %v867_v39 = vld [vmem:[%s2543_s3 + $0xc0] sm:$0xff]  ;;  %v868_v40 = vld [vmem:[%s2543_s3 + $0xc8] sm:$0xff]  ;;  %v1743_v45 = vpack.c.bf16 %v850_v36, %v849_v35 }
  0x2c   : > { %1730 = vmatprep.subr.bf16.mxu1 %v1729_v3  ;;  %v370_v41 = vld [vmem:[%s2541_s1 + $0x2d8] sm:$0xff]  ;;  %v369_v43 = vld [vmem:[%s2541_s1 + $0x2d0] sm:$0xff]  ;;  %v2248_v47 = vld [vmem:[%s2055_s26 + $0x48] sm:$0xff]  ;;  %v1745_v48 = vpack.c.bf16 %v868_v40, %v867_v39 }
  0x2d   : > { %1672 = vmatpush1.bf16.msra.mxu0 %v1671_v42  ;;  %v373_v42 = vld [vmem:[%s2541_s1 + $0x2f0] sm:$0xff]  ;;  %v851_v49 = vld [vmem:[%s2543_s3 + $0x40] sm:$0xff]  ;;  %v852_v50 = vld [vmem:[%s2543_s3 + $0x48] sm:$0xff] }
  0x2e   : > { %1674 = vmatprep.subr.bf16.mxu0 %v1673_v46  ;;  %601 = vmatmul.mubr.f32.vlgmr.msra.gmra.mrb[0].mxu1 %v2128_v58  ;;  %v2245_v44 = vld [vmem:[%s2055_s26 + $0x30] sm:$0xff]  ;;  %v1691_v46 = vpack.c.bf16 %v366_v38, %v363_v29  ;;  %v1693_v51 = vpack.c.bf16 %v373_v42, %v370_v41  ;;  %v875_v55 = vld [vmem:[%s2543_s3 + $0x100] sm:$0xff]  ;;  %v876_v56 = vld [vmem:[%s2543_s3 + $0x108] sm:$0xff]  ;;  %v1747_v60 = vpack.c.bf16 %v852_v50, %v851_v49 }
  0x2f   : > { %605 = vmatprep.mubr.f32.mxu1 %v2131_v59  ;;  %1732 = vmatpush3.bf16.msra.mxu1 %v1731_v4  ;;  %v869_v53 = vld [vmem:[%s2543_s3 + $0xd0] sm:$0xff]  ;;  %v2274_v57 = vld [vmem:[%s2055_s26 + $0x40] sm:$0xff]  ;;  %v258_v62 = vld [vmem:[%s2055_s26 + $0x58] sm:$0xff]  ;;  %v1761_v0 = vpack.c.bf16 %v876_v56, %v875_v55 }
  0x30   : > { %1734 = vmatprep.subr.bf16.mxu1 %v1733_v9  ;;  %v853_v1 = vld [vmem:[%s2543_s3 + $0x50] sm:$0xff]  ;;  %v878_v4 = vld [vmem:[%s2543_s3 + $0x118] sm:$0xff]  ;;  %v871_v6 = vld [vmem:[%s2543_s3 + $0xe0] sm:$0xff] }
  0x31   : > { %1676 = vmatpush1.bf16.msra.mxu0 %v1675_v52  ;;  %v372_v52 = vld [vmem:[%s2541_s1 + $0x2e8] sm:$0xff]  ;;  %v877_v3 = vld [vmem:[%s2543_s3 + $0x110] sm:$0xff]  ;;  %v855_v12 = vld [vmem:[%s2543_s3 + $0x60] sm:$0xff] }
  0x32   : > { %1678 = vmatprep.subr.bf16.mxu0 %v1677_v54  ;;  %606 = vmatmul.mubr.f32.gmra.mrb[2].mxu1 %v2181_v16  ;;  %v870_v54 = vld [vmem:[%s2543_s3 + $0xd8] sm:$0xff]  ;;  %v1695_v61 = vpack.c.bf16 %v372_v52, %v369_v43  ;;  %v257_v5 = vld [vmem:[%s2055_s26 + $0x50] sm:$0xff]  ;;  %v872_v7 = vld [vmem:[%s2543_s3 + $0xe8] sm:$0xff]  ;;  %v1765_v10 = vpack.c.bf16 %v878_v4, %v877_v3 }
  0x33   : > { %610 = vmatprep.mubr.f32.mxu1 %v2184_v19  ;;  %1736 = vmatpush3.bf16.msra.mxu1 %v1735_v17  ;;  %v1749_v63 = vpack.c.bf16 %v870_v54, %v869_v53  ;;  %v1753_v11 = vpack.c.bf16 %v872_v7, %v871_v6  ;;  %v856_v13 = vld [vmem:[%s2543_s3 + $0x68] sm:$0xff]  ;;  %v259_v14 = vld [vmem:[%s2055_s26 + $0x60] sm:$0xff]  ;;  %v873_v15 = vld [vmem:[%s2543_s3 + $0xf0] sm:$0xff] }
  0x34   : > { %1738 = vmatprep.subr.bf16.mxu1 %v1737_v20  ;;  %v874_v17 = vld [vmem:[%s2543_s3 + $0xf8] sm:$0xff]  ;;  %v1755_v20 = vpack.c.bf16 %v856_v13, %v855_v12  ;;  %v261_v21 = vld [vmem:[%s2055_s26 + $0x70] sm:$0xff]  ;;  %v264_v22 = vld [vmem:[%s2055_s26 + $0x88] sm:$0xff] }
  0x35   : > { %1680 = vmatpush1.bf16.msra.mxu0 %v1679_v2  ;;  %v854_v2 = vld [vmem:[%s2543_s3 + $0x58] sm:$0xff]  ;;  %v267_v24 = vld [vmem:[%s2055_s26 + $0xa0] sm:$0xff]  ;;  %v269_v26 = vld [vmem:[%s2055_s26 + $0xb0] sm:$0xff] }
  0x36   : > { %1682 = vmatprep.subr.bf16.mxu0 %v1681_v8  ;;  %611 = vmatmul.mubr.f32.gmra.mrb[4].mxu1 %v2213_v30  ;;  %v260_v8 = vld [vmem:[%s2055_s26 + $0x68] sm:$0xff]  ;;  %v1751_v9 = vpack.c.bf16 %v854_v2, %v853_v1  ;;  %v270_v25 = vld [vmem:[%s2055_s26 + $0xb8] sm:$0xff]  ;;  %v271_v28 = vld [vmem:[%s2055_s26 + $0xc0] sm:$0xff] }
  0x37   : > { %615 = vmatprep.mubr.f32.mxu1 %v2216_v33  ;;  %1740 = vmatpush3.bf16.msra.mxu1 %v1739_v31  ;;  %v272_v27 = vld [vmem:[%s2055_s26 + $0xc8] sm:$0xff]  ;;  %v274_v29 = vld [vmem:[%s2055_s26 + $0xd8] sm:$0xff]  ;;  %v857_v35 = vld [vmem:[%s2543_s3 + $0x70] sm:$0xff] }
  0x38   : > { %1742 = vmatprep.subr.bf16.mxu1 %v1741_v34  ;;  %v276_v31 = vld [vmem:[%s2055_s26 + $0xe8] sm:$0xff]  ;;  %v277_v34 = vld [vmem:[%s2055_s26 + $0xf0] sm:$0xff]  ;;  %v858_v36 = vld [vmem:[%s2543_s3 + $0x78] sm:$0xff] }
  0x39   : > { %1684 = vmatpush1.bf16.msra.mxu0 %v1683_v18  ;;  %v262_v18 = vld [vmem:[%s2055_s26 + $0x78] sm:$0xff]  ;;  %v879_v38 = vld [vmem:[%s2543_s3 + $0x120] sm:$0xff]  ;;  %v880_v39 = vld [vmem:[%s2543_s3 + $0x128] sm:$0xff] }
  0x3a   : > { %1686 = vmatprep.subr.bf16.mxu0 %v1685_v23  ;;  %616 = vmatmul.mubr.f32.gmra.mrb[6].mxu1 %v2245_v44  ;;  %v268_v23 = vld [vmem:[%s2055_s26 + $0xa8] sm:$0xff]  ;;  %v1769_v40 = vpack.c.bf16 %v880_v39, %v879_v38  ;;  %v881_v41 = vld [vmem:[%s2543_s3 + $0x130] sm:$0xff]  ;;  %v882_v42 = vld [vmem:[%s2543_s3 + $0x138] sm:$0xff] }
  0x3b   : > { %620 = vmatprep.mubr.f32.mxu1 %v2248_v47  ;;  %1744 = vmatpush3.bf16.msra.mxu1 %v1743_v45  ;;  %v1773_v43 = vpack.c.bf16 %v882_v42, %v881_v41 }
  0x3c   : > { %1746 = vmatprep.subr.bf16.mxu1 %v1745_v48 }
  0x3d   : > { %1688 = vmatpush1.bf16.msra.mxu0 %v1687_v32  ;;  %v275_v32 = vld [vmem:[%s2055_s26 + $0xe0] sm:$0xff] }
  0x3e   : > { %1690 = vmatprep.subr.bf16.mxu0 %v1689_v37  ;;  %621 = vmatmul.mubr.f32.gmra.mrb[8].mxu1 %v2274_v57  ;;  %v1759_v37 = vpack.c.bf16 %v858_v36, %v857_v35 }
  0x3f   : > { %625 = vmatprep.mubr.f32.mxu1 %v258_v62  ;;  %1748 = vmatpush3.bf16.msra.mxu1 %v1747_v60 }
  0x40   : > { %1750 = vmatprep.subr.bf16.mxu1 %v1749_v63 }
  0x41   : > { %1692 = vmatpush1.bf16.msra.mxu0 %v1691_v46 }
  0x42   : > { %1694 = vmatprep.subr.bf16.mxu0 %v1693_v51  ;;  %626 = vmatmul.mubr.f32.gmra.mrb[10].mxu1 %v257_v5 }
  0x43   : > { %630 = vmatprep.mubr.f32.mxu1 %v260_v8  ;;  %1752 = vmatpush3.bf16.msra.mxu1 %v1751_v9 }
  0x44   : > { %1754 = vmatprep.subr.bf16.mxu1 %v1753_v11 }
  0x45   : > { %1696 = vmatpush1.bf16.msra.mxu0 %v1695_v61 }
  0x46   : > { %1762 = vmatprep.subr.bf16.mxu0 %v1761_v0  ;;  %631 = vmatmul.mubr.f32.gmra.mrb[12].mxu1 %v259_v14 }
  0x47   : > { %635 = vmatprep.mubr.f32.mxu1 %v262_v18  ;;  %1756 = vmatpush3.bf16.msra.mxu1 %v1755_v20 }
  0x48   : > { %440 = vmatmul.mubr.f32.vlgmr.msra.gmra.mrb[0].mxu0 %v2128_v58  ;;  %v1757_v58 = vpack.c.bf16 %v874_v17, %v873_v15 }
  0x49   : > { %445 = vmatprep.mubr.f32.mxu0 %v2131_v59  ;;  %1764 = vmatpush3.bf16.msra.mxu0 %v1761_v0  ;;  %v263_v59 = vld [vmem:[%s2055_s26 + $0x80] sm:$0xff] }
  0x4a   : > { %1766 = vmatprep.subr.bf16.mxu0 %v1765_v10  ;;  %636 = vmatmul.mubr.f32.gmra.mrb[14].mxu1 %v261_v21 }
  0x4b   : > { %1758 = vmatprep.subr.bf16.mxu1 %v1757_v58  ;;  %640 = vmatprep.mubr.f32.mxu1 %v264_v22 }
  0x4c   : > { %446 = vmatmul.mubr.f32.gmra.mrb[2].mxu0 %v2181_v16  ;;  %v266_v16 = vld [vmem:[%s2055_s26 + $0x98] sm:$0xff]  ;;  %1760 = vmatpush3.bf16.msra.mxu1 %v1759_v37 }
  0x4d   : > { %451 = vmatprep.mubr.f32.mxu0 %v2184_v19  ;;  %1768 = vmatpush3.bf16.msra.mxu0 %v1765_v10  ;;  %v265_v19 = vld [vmem:[%s2055_s26 + $0x90] sm:$0xff] }
  0x4e   : > { %641 = vmatmul.mubr.f32.gmra.mrb[16].mxu1 %v263_v59  ;;  %1770 = vmatprep.subr.bf16.mxu0 %v1769_v40 }
  0x4f   : > { %645 = vmatprep.mubr.f32.mxu1 %v266_v16 }
  0x50   : > { %452 = vmatmul.mubr.f32.gmra.mrb[4].mxu0 %v2213_v30  ;;  %v273_v30 = vld [vmem:[%s2055_s26 + $0xd0] sm:$0xff] }
  0x51   : > { %457 = vmatprep.mubr.f32.mxu0 %v2216_v33  ;;  %v278_v33 = vld [vmem:[%s2055_s26 + $0xf8] sm:$0xff]  ;;  %1772 = vmatpush3.bf16.msra.mxu0 %v1769_v40 }
  0x52   : > { %646 = vmatmul.mubr.f32.gmra.mrb[18].mxu1 %v265_v19  ;;  %1774 = vmatprep.subr.bf16.mxu0 %v1773_v43 }
  0x53   : > { %650 = vmatprep.mubr.f32.mxu1 %v268_v23 }
  0x54   : > { %458 = vmatmul.mubr.f32.gmra.mrb[6].mxu0 %v2245_v44  ;;  %v732_v44 = vlaneseq }
  0x55   : > { %463 = vmatprep.mubr.f32.mxu0 %v2248_v47  ;;  %1776 = vmatpush3.bf16.msra.mxu0 %v1773_v43  ;;  %v730_v47 = vld [vmem:[%s2542_s2] sm:$0x7] }
  0x56   : > { %651 = vmatmul.mubr.f32.gmra.mrb[20].mxu1 %v267_v24  ;;  %v733_v45 = vshrl.u32 %v732_v44, 7 }
  0x57   : > { %655 = vmatprep.mubr.f32.mxu1 %v270_v25 }
  0x58   : > { %464 = vmatmul.mubr.f32.gmra.mrb[8].mxu0 %v2274_v57  ;;  %v742_v46 = vsub.s32 2, %v733_v45  ;;  %v734_v3 = vsub.s32 0, %v733_v45  ;;  %v738_v6 = vsub.s32 1, %v733_v45 }
  0x59   : > { %469 = vmatprep.mubr.f32.mxu0 %v258_v62 }
  0x5a   : > { %656 = vmatmul.mubr.f32.gmra.mrb[22].mxu1 %v269_v26  ;;  %v2360_v49 = vrot.slane %v730_v47, %v742_v46  ;;  %v2382_v10 = vrot.slane %v730_v47, %v734_v3  ;;  %v2384_v13 = vrot.slane %v730_v47, %v738_v6 }
  0x5b   : > { %660 = vmatprep.mubr.f32.mxu1 %v272_v27 }
  0x5c   : > { %470 = vmatmul.mubr.f32.gmra.mrb[10].mxu0 %v257_v5 }
  0x5d   : > { %475 = vmatprep.mubr.f32.mxu0 %v260_v8 }
  0x5e   : > { %661 = vmatmul.mubr.f32.gmra.mrb[24].mxu1 %v271_v28 }
  0x5f   : > { %665 = vmatprep.mubr.f32.mxu1 %v274_v29 }
  0x60   : > { %476 = vmatmul.mubr.f32.gmra.mrb[12].mxu0 %v259_v14 }
  0x61   : > { %481 = vmatprep.mubr.f32.mxu0 %v262_v18 }
  0x62   : > { %666 = vmatmul.mubr.f32.gmra.mrb[26].mxu1 %v273_v30 }
  0x63   : > { %670 = vmatprep.mubr.f32.mxu1 %v276_v31 }
  0x64   : > { %482 = vmatmul.mubr.f32.gmra.mrb[14].mxu0 %v261_v21 }
  0x65   : > { %487 = vmatprep.mubr.f32.mxu0 %v264_v22 }
  0x66   : > { %671 = vmatmul.mubr.f32.gmra.mrb[28].mxu1 %v275_v32 }
  0x67   : > { %675 = vmatprep.mubr.f32.mxu1 %v278_v33 }
  0x68   : > { %488 = vmatmul.mubr.f32.gmra.mrb[16].mxu0 %v263_v59 }
  0x69   : > { %493 = vmatprep.mubr.f32.mxu0 %v266_v16 }
  0x6a   : > { %676 = vmatmul.mubr.f32.gmra.mrb[30].mxu1 %v277_v34 }
  0x6c   : > { %494 = vmatmul.mubr.f32.gmra.mrb[18].mxu0 %v265_v19 }
  0x6d   : > { %499 = vmatprep.mubr.f32.mxu0 %v268_v23 }
  0x70   : > { %500 = vmatmul.mubr.f32.gmra.mrb[20].mxu0 %v267_v24 }
  0x71   : > { %505 = vmatprep.mubr.f32.mxu0 %v270_v25 }
  0x74   : > { %506 = vmatmul.mubr.f32.gmra.mrb[22].mxu0 %v269_v26 }
  0x75   : > { %511 = vmatprep.mubr.f32.mxu0 %v272_v27 }
  0x78   : > { %512 = vmatmul.mubr.f32.gmra.mrb[24].mxu0 %v271_v28 }
  0x79   : > { %517 = vmatprep.mubr.f32.mxu0 %v274_v29 }
  0x7c   : > { %518 = vmatmul.mubr.f32.gmra.mrb[26].mxu0 %v273_v30 }
  0x7d   : > { %523 = vmatprep.mubr.f32.mxu0 %v276_v31 }
  0x80   : > { %524 = vmatmul.mubr.f32.gmra.mrb[28].mxu0 %v275_v32 }
  0x81   : > { %529 = vmatprep.mubr.f32.mxu0 %v278_v33 }
  0x84   : > { %530 = vmatmul.mubr.f32.gmra.mrb[30].mxu0 %v277_v34 }
 0x101   : > { %v1441_v48 = vpop.f32.mrb[0].mxu1 }
 0x102   : > { %v1442_v50 = vpop.f32.mrb[1].mxu1 }
 0x103   : > { %v1443_v51 = vadd.f32 %v1442_v50, %v1441_v48 }
 0x105   : > { %684 = vst.msk [vmem:[%s2365_s6 + $0x10] sm:$0xff] %vm683_vm0, %v1443_v51  ;;  %v749_v52 = vsub.f32 %v1443_v51, %v2360_v49  ;;  %v1444_v53 = vpop.f32.mrb[2].mxu1 }
 0x106   : > { %v1445_v54 = vpop.f32.mrb[3].mxu1 }
 0x107   : > { %v797_v55 = vmul.f32 %v749_v52, %v749_v52  ;;  %v1446_v56 = vadd.f32 %v1445_v54, %v1444_v53 }
 0x109   : > { %687 = vst.msk [vmem:[%s2365_s6 + $0x28] sm:$0xff] %vm683_vm0, %v1446_v56  ;;  %v752_v57 = vsub.f32 %v1446_v56, %v2360_v49  ;;  %v1447_v60 = vpop.f32.mrb[4].mxu1  ;;  %1609 = vmatprep.mubr.msk.f32.mxu0 %vm683_vm0, %v797_v55 }
 0x10a   : > { %v1448_v61 = vpop.f32.mrb[5].mxu1 }
 0x10b   : > { %v800_v62 = vmul.f32 %v752_v57, %v752_v57  ;;  %v1449_v63 = vadd.f32 %v1448_v61, %v1447_v60 }
 0x10d   : > { %690 = vst.msk [vmem:[%s2365_s6 + $0x40] sm:$0xff] %vm683_vm0, %v1449_v63  ;;  %v755_v0 = vsub.f32 %v1449_v63, %v2360_v49  ;;  %v1450_v1 = vpop.f32.mrb[6].mxu1  ;;  %1610 = vmatmul.mubr.msk.f32.vlgmr.msra.gmra.mrb[32].mxu0 %vm683_vm0, %v800_v62 }
 0x10e   : > { %v1451_v2 = vpop.f32.mrb[7].mxu1 }
 0x10f   : > { %v803_v4 = vmul.f32 %v755_v0, %v755_v0  ;;  %v1452_v5 = vadd.f32 %v1451_v2, %v1450_v1 }
 0x111   : > { %693 = vst.msk [vmem:[%s2365_s6 + $0x58] sm:$0xff] %vm683_vm0, %v1452_v5  ;;  %v758_v7 = vsub.f32 %v1452_v5, %v2360_v49  ;;  %v1453_v8 = vpop.f32.mrb[8].mxu1  ;;  %1612 = vmatprep.mubr.msk.f32.mxu0 %vm683_vm0, %v803_v4 }
 0x112   : > { %v1454_v9 = vpop.f32.mrb[9].mxu1 }
 0x113   : > { %v806_v11 = vmul.f32 %v758_v7, %v758_v7  ;;  %v1455_v12 = vadd.f32 %v1454_v9, %v1453_v8 }
 0x115   : > { %696 = vst.msk [vmem:[%s2365_s6 + $0x70] sm:$0xff] %vm683_vm0, %v1455_v12  ;;  %v761_v14 = vsub.f32 %v1455_v12, %v2360_v49  ;;  %v1456_v15 = vpop.f32.mrb[10].mxu1  ;;  %1613 = vmatmul.mubr.msk.f32.gmra.mrb[34].mxu0 %vm683_vm0, %v806_v11 }
 0x116   : > { %v1457_v18 = vpop.f32.mrb[11].mxu1 }
 0x117   : > { %v809_v21 = vmul.f32 %v761_v14, %v761_v14  ;;  %v1458_v22 = vadd.f32 %v1457_v18, %v1456_v15 }
 0x119   : > { %699 = vst.msk [vmem:[%s2365_s6 + $0x88] sm:$0xff] %vm683_vm0, %v1458_v22  ;;  %v764_v16 = vsub.f32 %v1458_v22, %v2360_v49  ;;  %v1459_v19 = vpop.f32.mrb[12].mxu1  ;;  %1615 = vmatprep.mubr.msk.f32.mxu0 %vm683_vm0, %v809_v21 }
 0x11a   : > { %v1460_v25 = vpop.f32.mrb[13].mxu1 }
 0x11b   : > { %v441_v17 = vpop.f32.mrb[0].mxu0  ;;  %v812_v29 = vmul.f32 %v764_v16, %v764_v16  ;;  %v1461_v30 = vadd.f32 %v1460_v25, %v1459_v19 }
 0x11c   : > { %681 = vst [vmem:[%s2365_s6] sm:$0xff] %v441_v17  ;;  %v747_v20 = vsub.f32 %v441_v17, %v2382_v10  ;;  %v443_v58 = vpop.f32.mrb[1].mxu0 }
 0x11d   : > { %682 = vst [vmem:[%s2365_s6 + $0x8] sm:$0xff] %v443_v58  ;;  %v748_v59 = vsub.f32 %v443_v58, %v2384_v13  ;;  %702 = vst.msk [vmem:[%s2365_s6 + $0xa0] sm:$0xff] %vm683_vm0, %v1461_v30  ;;  %v767_v32 = vsub.f32 %v1461_v30, %v2360_v49  ;;  %v1462_v33 = vpop.f32.mrb[14].mxu1  ;;  %1616 = vmatmul.mubr.msk.f32.gmra.mrb[36].mxu0 %vm683_vm0, %v812_v29 }
 0x11e   : > { %v795_v26 = vmul.f32 %v747_v20, %v747_v20  ;;  %v1463_v36 = vpop.f32.mrb[15].mxu1 }
 0x11f   : > { %v796_v23 = vmul.f32 %v748_v59, %v748_v59  ;;  %v447_v24 = vpop.f32.mrb[2].mxu0  ;;  %v815_v40 = vmul.f32 %v767_v32, %v767_v32  ;;  %v1464_v41 = vadd.f32 %v1463_v36, %v1462_v33 }
 0x120   : > { %685 = vst [vmem:[%s2365_s6 + $0x18] sm:$0xff] %v447_v24  ;;  %v750_v27 = vsub.f32 %v447_v24, %v2382_v10  ;;  %v449_v28 = vpop.f32.mrb[3].mxu0 }
 0x121   : > { %686 = vst [vmem:[%s2365_s6 + $0x20] sm:$0xff] %v449_v28  ;;  %v751_v31 = vsub.f32 %v449_v28, %v2384_v13  ;;  %995 = vmatprep.mubr.f32.mxu1 %v796_v23  ;;  %705 = vst.msk [vmem:[%s2365_s6 + $0xb8] sm:$0xff] %vm683_vm0, %v1464_v41  ;;  %v770_v43 = vsub.f32 %v1464_v41, %v2360_v49  ;;  %v1465_v44 = vpop.f32.mrb[16].mxu1  ;;  %1618 = vmatprep.mubr.msk.f32.mxu0 %vm683_vm0, %v815_v40 }
 0x122   : > { %996 = vmatmul.mubr.f32.vlgmr.msra.gmra.mrb[32].mxu1 %v795_v26  ;;  %v798_v37 = vmul.f32 %v750_v27, %v750_v27  ;;  %v1466_v47 = vpop.f32.mrb[17].mxu1 }
 0x123   : > { %v799_v34 = vmul.f32 %v751_v31, %v751_v31  ;;  %v453_v35 = vpop.f32.mrb[4].mxu0  ;;  %v818_v52 = vmul.f32 %v770_v43, %v770_v43  ;;  %v1467_v53 = vadd.f32 %v1466_v47, %v1465_v44 }
 0x124   : > { %688 = vst [vmem:[%s2365_s6 + $0x30] sm:$0xff] %v453_v35  ;;  %v753_v38 = vsub.f32 %v453_v35, %v2382_v10  ;;  %v455_v39 = vpop.f32.mrb[5].mxu0 }
 0x125   : > { %689 = vst [vmem:[%s2365_s6 + $0x38] sm:$0xff] %v455_v39  ;;  %v754_v42 = vsub.f32 %v455_v39, %v2384_v13  ;;  %1000 = vmatprep.mubr.f32.mxu1 %v799_v34  ;;  %708 = vst.msk [vmem:[%s2365_s6 + $0xd0] sm:$0xff] %vm683_vm0, %v1467_v53  ;;  %v773_v55 = vsub.f32 %v1467_v53, %v2360_v49  ;;  %v1468_v56 = vpop.f32.mrb[18].mxu1  ;;  %1619 = vmatmul.mubr.msk.f32.gmra.mrb[38].mxu0 %vm683_vm0, %v818_v52 }
 0x126   : > { %1001 = vmatmul.mubr.f32.gmra.mrb[34].mxu1 %v798_v37  ;;  %v801_v48 = vmul.f32 %v753_v38, %v753_v38  ;;  %v1469_v61 = vpop.f32.mrb[19].mxu1 }
 0x127   : > { %v802_v45 = vmul.f32 %v754_v42, %v754_v42  ;;  %v459_v46 = vpop.f32.mrb[6].mxu0  ;;  %v821_v1 = vmul.f32 %v773_v55, %v773_v55  ;;  %v1470_v2 = vadd.f32 %v1469_v61, %v1468_v56 }
 0x128   : > { %691 = vst [vmem:[%s2365_s6 + $0x48] sm:$0xff] %v459_v46  ;;  %v756_v50 = vsub.f32 %v459_v46, %v2382_v10  ;;  %v461_v51 = vpop.f32.mrb[7].mxu0 }
 0x129   : > { %692 = vst [vmem:[%s2365_s6 + $0x50] sm:$0xff] %v461_v51  ;;  %v757_v54 = vsub.f32 %v461_v51, %v2384_v13  ;;  %1005 = vmatprep.mubr.f32.mxu1 %v802_v45  ;;  %711 = vst.msk [vmem:[%s2365_s6 + $0xe8] sm:$0xff] %vm683_vm0, %v1470_v2  ;;  %v776_v4 = vsub.f32 %v1470_v2, %v2360_v49  ;;  %v1471_v5 = vpop.f32.mrb[20].mxu1  ;;  %1621 = vmatprep.mubr.msk.f32.mxu0 %vm683_vm0, %v821_v1 }
 0x12a   : > { %1006 = vmatmul.mubr.f32.gmra.mrb[36].mxu1 %v801_v48  ;;  %v804_v62 = vmul.f32 %v756_v50, %v756_v50  ;;  %v1472_v8 = vpop.f32.mrb[21].mxu1 }
 0x12b   : > { %v805_v57 = vmul.f32 %v757_v54, %v757_v54  ;;  %v465_v60 = vpop.f32.mrb[8].mxu0  ;;  %v824_v14 = vmul.f32 %v776_v4, %v776_v4  ;;  %v1473_v15 = vadd.f32 %v1472_v8, %v1471_v5 }
 0x12c   : > { %694 = vst [vmem:[%s2365_s6 + $0x60] sm:$0xff] %v465_v60  ;;  %v759_v63 = vsub.f32 %v465_v60, %v2382_v10  ;;  %v467_v0 = vpop.f32.mrb[9].mxu0 }
 0x12d   : > { %695 = vst [vmem:[%s2365_s6 + $0x68] sm:$0xff] %v467_v0  ;;  %v760_v3 = vsub.f32 %v467_v0, %v2384_v13  ;;  %1010 = vmatprep.mubr.f32.mxu1 %v805_v57  ;;  %714 = vst.msk [vmem:[%s2365_s6 + $0x100] sm:$0xff] %vm683_vm0, %v1473_v15  ;;  %v779_v18 = vsub.f32 %v1473_v15, %v2360_v49  ;;  %v1474_v20 = vpop.f32.mrb[22].mxu1  ;;  %1622 = vmatmul.mubr.msk.f32.gmra.mrb[40].mxu0 %vm683_vm0, %v824_v14 }
 0x12e   : > { %1011 = vmatmul.mubr.f32.gmra.mrb[38].mxu1 %v804_v62  ;;  %v807_v9 = vmul.f32 %v759_v63, %v759_v63  ;;  %v1475_v22 = vpop.f32.mrb[23].mxu1 }
 0x12f   : > { %v808_v6 = vmul.f32 %v760_v3, %v760_v3  ;;  %v471_v7 = vpop.f32.mrb[10].mxu0  ;;  %v827_v23 = vmul.f32 %v779_v18, %v779_v18  ;;  %v1476_v24 = vadd.f32 %v1475_v22, %v1474_v20 }
 0x130   : > { %697 = vst [vmem:[%s2365_s6 + $0x78] sm:$0xff] %v471_v7  ;;  %v762_v11 = vsub.f32 %v471_v7, %v2382_v10  ;;  %v473_v12 = vpop.f32.mrb[11].mxu0 }
 0x131   : > { %698 = vst [vmem:[%s2365_s6 + $0x80] sm:$0xff] %v473_v12  ;;  %v763_v17 = vsub.f32 %v473_v12, %v2384_v13  ;;  %1015 = vmatprep.mubr.f32.mxu1 %v808_v6  ;;  %717 = vst.msk [vmem:[%s2365_s6 + $0x118] sm:$0xff] %vm683_vm0, %v1476_v24  ;;  %v782_v26 = vsub.f32 %v1476_v24, %v2360_v49  ;;  %v1477_v27 = vpop.f32.mrb[24].mxu1  ;;  %1624 = vmatprep.mubr.msk.f32.mxu0 %vm683_vm0, %v827_v23 }
 0x132   : > { %1016 = vmatmul.mubr.f32.gmra.mrb[40].mxu1 %v807_v9  ;;  %v810_v59 = vmul.f32 %v762_v11, %v762_v11  ;;  %v1478_v30 = vpop.f32.mrb[25].mxu1 }
 0x133   : > { %v811_v58 = vmul.f32 %v763_v17, %v763_v17  ;;  %v477_v21 = vpop.f32.mrb[12].mxu0  ;;  %v830_v34 = vmul.f32 %v782_v26, %v782_v26  ;;  %v1479_v35 = vadd.f32 %v1478_v30, %v1477_v27 }
 0x134   : > { %700 = vst [vmem:[%s2365_s6 + $0x90] sm:$0xff] %v477_v21  ;;  %v765_v16 = vsub.f32 %v477_v21, %v2382_v10  ;;  %v479_v19 = vpop.f32.mrb[13].mxu0 }
 0x135   : > { %701 = vst [vmem:[%s2365_s6 + $0x98] sm:$0xff] %v479_v19  ;;  %v766_v25 = vsub.f32 %v479_v19, %v2384_v13  ;;  %1020 = vmatprep.mubr.f32.mxu1 %v811_v58  ;;  %720 = vst.msk [vmem:[%s2365_s6 + $0x130] sm:$0xff] %vm683_vm0, %v1479_v35  ;;  %v785_v37 = vsub.f32 %v1479_v35, %v2360_v49  ;;  %v1480_v38 = vpop.f32.mrb[26].mxu1  ;;  %1625 = vmatmul.mubr.msk.f32.gmra.mrb[42].mxu0 %vm683_vm0, %v830_v34 }
 0x136   : > { %1021 = vmatmul.mubr.f32.gmra.mrb[42].mxu1 %v810_v59  ;;  %v813_v31 = vmul.f32 %v765_v16, %v765_v16  ;;  %v1481_v41 = vpop.f32.mrb[27].mxu1 }
 0x137   : > { %v814_v28 = vmul.f32 %v766_v25, %v766_v25  ;;  %v483_v29 = vpop.f32.mrb[14].mxu0  ;;  %v833_v45 = vmul.f32 %v785_v37, %v785_v37  ;;  %v1482_v46 = vadd.f32 %v1481_v41, %v1480_v38 }
 0x138   : > { %703 = vst [vmem:[%s2365_s6 + $0xa8] sm:$0xff] %v483_v29  ;;  %v768_v32 = vsub.f32 %v483_v29, %v2382_v10  ;;  %v485_v33 = vpop.f32.mrb[15].mxu0 }
 0x139   : > { %704 = vst [vmem:[%s2365_s6 + $0xb0] sm:$0xff] %v485_v33  ;;  %v769_v36 = vsub.f32 %v485_v33, %v2384_v13  ;;  %1025 = vmatprep.mubr.f32.mxu1 %v814_v28  ;;  %723 = vst.msk [vmem:[%s2365_s6 + $0x148] sm:$0xff] %vm683_vm0, %v1482_v46  ;;  %v788_v48 = vsub.f32 %v1482_v46, %v2360_v49  ;;  %v1483_v50 = vpop.f32.mrb[28].mxu1  ;;  %1627 = vmatprep.mubr.msk.f32.mxu0 %vm683_vm0, %v833_v45 }
 0x13a   : > { %1026 = vmatmul.mubr.f32.gmra.mrb[44].mxu1 %v813_v31  ;;  %v816_v42 = vmul.f32 %v768_v32, %v768_v32  ;;  %v1484_v53 = vpop.f32.mrb[29].mxu1 }
 0x13b   : > { %v817_v39 = vmul.f32 %v769_v36, %v769_v36  ;;  %v489_v40 = vpop.f32.mrb[16].mxu0  ;;  %v836_v57 = vmul.f32 %v788_v48, %v788_v48  ;;  %v1485_v60 = vadd.f32 %v1484_v53, %v1483_v50 }
 0x13c   : > { %706 = vst [vmem:[%s2365_s6 + $0xc0] sm:$0xff] %v489_v40  ;;  %v771_v43 = vsub.f32 %v489_v40, %v2382_v10  ;;  %v491_v44 = vpop.f32.mrb[17].mxu0 }
 0x13d   : > { %707 = vst [vmem:[%s2365_s6 + $0xc8] sm:$0xff] %v491_v44  ;;  %v772_v47 = vsub.f32 %v491_v44, %v2384_v13  ;;  %1030 = vmatprep.mubr.f32.mxu1 %v817_v39  ;;  %726 = vst.msk [vmem:[%s2365_s6 + $0x160] sm:$0xff] %vm683_vm0, %v1485_v60  ;;  %v791_v62 = vsub.f32 %v1485_v60, %v2360_v49  ;;  %v1486_v63 = vpop.f32.mrb[30].mxu1  ;;  %1628 = vmatmul.mubr.msk.f32.gmra.mrb[44].mxu0 %vm683_vm0, %v836_v57 }
 0x13e   : > { %1031 = vmatmul.mubr.f32.gmra.mrb[46].mxu1 %v816_v42  ;;  %v819_v54 = vmul.f32 %v771_v43, %v771_v43  ;;  %v1487_v2 = vpop.f32.mrb[31].mxu1 }
 0x13f   : > { %v820_v51 = vmul.f32 %v772_v47, %v772_v47  ;;  %v495_v52 = vpop.f32.mrb[18].mxu0  ;;  %v839_v6 = vmul.f32 %v791_v62, %v791_v62  ;;  %v1488_v7 = vadd.f32 %v1487_v2, %v1486_v63 }
 0x140   : > { %709 = vst [vmem:[%s2365_s6 + $0xd8] sm:$0xff] %v495_v52  ;;  %v774_v55 = vsub.f32 %v495_v52, %v2382_v10  ;;  %v497_v56 = vpop.f32.mrb[19].mxu0 }
 0x141   : > { %710 = vst [vmem:[%s2365_s6 + $0xe0] sm:$0xff] %v497_v56  ;;  %v775_v61 = vsub.f32 %v497_v56, %v2384_v13  ;;  %1035 = vmatprep.mubr.f32.mxu1 %v820_v51  ;;  %729 = vst.msk [vmem:[%s2365_s6 + $0x178] sm:$0xff] %vm683_vm0, %v1488_v7  ;;  %v794_v9 = vsub.f32 %v1488_v7, %v2360_v49  ;;  %1630 = vmatprep.mubr.msk.f32.mxu0 %vm683_vm0, %v839_v6 }
 0x142   : > { %1036 = vmatmul.mubr.f32.gmra.mrb[48].mxu1 %v819_v54  ;;  %v822_v3 = vmul.f32 %v774_v55, %v774_v55 }
 0x143   : > { %v823_v0 = vmul.f32 %v775_v61, %v775_v61  ;;  %v501_v1 = vpop.f32.mrb[20].mxu0  ;;  %v842_v18 = vmul.f32 %v794_v9, %v794_v9 }
 0x144   : > { %712 = vst [vmem:[%s2365_s6 + $0xf0] sm:$0xff] %v501_v1  ;;  %v777_v4 = vsub.f32 %v501_v1, %v2382_v10  ;;  %v503_v5 = vpop.f32.mrb[21].mxu0 }
 0x145   : > { %713 = vst [vmem:[%s2365_s6 + $0xf8] sm:$0xff] %v503_v5  ;;  %v778_v8 = vsub.f32 %v503_v5, %v2384_v13  ;;  %1040 = vmatprep.mubr.f32.mxu1 %v823_v0  ;;  %1631 = vmatmul.mubr.msk.f32.gmra.mrb[46].mxu0 %vm683_vm0, %v842_v18 }
 0x146   : > { %1041 = vmatmul.mubr.f32.gmra.mrb[50].mxu1 %v822_v3  ;;  %v825_v14 = vmul.f32 %v777_v4, %v777_v4 }
 0x147   : > { %v826_v11 = vmul.f32 %v778_v8, %v778_v8  ;;  %v507_v12 = vpop.f32.mrb[22].mxu0 }
 0x148   : > { %715 = vst [vmem:[%s2365_s6 + $0x108] sm:$0xff] %v507_v12  ;;  %v780_v15 = vsub.f32 %v507_v12, %v2382_v10  ;;  %v509_v17 = vpop.f32.mrb[23].mxu0 }
 0x149   : > { %716 = vst [vmem:[%s2365_s6 + $0x110] sm:$0xff] %v509_v17  ;;  %v781_v20 = vsub.f32 %v509_v17, %v2384_v13  ;;  %1045 = vmatprep.mubr.f32.mxu1 %v826_v11 }
 0x14a   : > { %1046 = vmatmul.mubr.f32.gmra.mrb[52].mxu1 %v825_v14  ;;  %v828_v21 = vmul.f32 %v780_v15, %v780_v15 }
 0x14b   : > { %v829_v49 = vmul.f32 %v781_v20, %v781_v20  ;;  %v513_v58 = vpop.f32.mrb[24].mxu0 }
 0x14c   : > { %718 = vst [vmem:[%s2365_s6 + $0x120] sm:$0xff] %v513_v58  ;;  %v783_v22 = vsub.f32 %v513_v58, %v2382_v10  ;;  %v515_v59 = vpop.f32.mrb[25].mxu0 }
 0x14d   : > { %719 = vst [vmem:[%s2365_s6 + $0x128] sm:$0xff] %v515_v59  ;;  %v784_v16 = vsub.f32 %v515_v59, %v2384_v13  ;;  %1050 = vmatprep.mubr.f32.mxu1 %v829_v49 }
 0x14e   : > { %1051 = vmatmul.mubr.f32.gmra.mrb[54].mxu1 %v828_v21  ;;  %v831_v24 = vmul.f32 %v783_v22, %v783_v22 }
 0x14f   : > { %v832_v19 = vmul.f32 %v784_v16, %v784_v16  ;;  %v519_v23 = vpop.f32.mrb[26].mxu0 }
 0x150   : > { %721 = vst [vmem:[%s2365_s6 + $0x138] sm:$0xff] %v519_v23  ;;  %v786_v25 = vsub.f32 %v519_v23, %v2382_v10  ;;  %v521_v26 = vpop.f32.mrb[27].mxu0 }
 0x151   : > { %722 = vst [vmem:[%s2365_s6 + $0x140] sm:$0xff] %v521_v26  ;;  %v787_v27 = vsub.f32 %v521_v26, %v2384_v13  ;;  %1055 = vmatprep.mubr.f32.mxu1 %v832_v19 }
 0x152   : > { %1056 = vmatmul.mubr.f32.gmra.mrb[56].mxu1 %v831_v24  ;;  %v834_v30 = vmul.f32 %v786_v25, %v786_v25 }
 0x153   : > { %v835_v28 = vmul.f32 %v787_v27, %v787_v27  ;;  %v525_v29 = vpop.f32.mrb[28].mxu0 }
 0x154   : > { %724 = vst [vmem:[%s2365_s6 + $0x150] sm:$0xff] %v525_v29  ;;  %v789_v31 = vsub.f32 %v525_v29, %v2382_v10  ;;  %v527_v32 = vpop.f32.mrb[29].mxu0 }
 0x155   : > { %725 = vst [vmem:[%s2365_s6 + $0x158] sm:$0xff] %v527_v32  ;;  %v790_v33 = vsub.f32 %v527_v32, %v2384_v13  ;;  %1060 = vmatprep.mubr.f32.mxu1 %v835_v28 }
 0x156   : > { %1061 = vmatmul.mubr.f32.gmra.mrb[58].mxu1 %v834_v30  ;;  %v837_v36 = vmul.f32 %v789_v31, %v789_v31 }
 0x157   : > { %v838_v34 = vmul.f32 %v790_v33, %v790_v33  ;;  %v531_v35 = vpop.f32.mrb[30].mxu0 }
 0x158   : > { %727 = vst [vmem:[%s2365_s6 + $0x168] sm:$0xff] %v531_v35  ;;  %v792_v37 = vsub.f32 %v531_v35, %v2382_v10  ;;  %v533_v38 = vpop.f32.mrb[31].mxu0 }
 0x159   : > { %728 = vst [vmem:[%s2365_s6 + $0x170] sm:$0xff] %v533_v38  ;;  %v793_v39 = vsub.f32 %v533_v38, %v2384_v13  ;;  %1065 = vmatprep.mubr.f32.mxu1 %v838_v34 }
 0x15a   : > { %1066 = vmatmul.mubr.f32.gmra.mrb[60].mxu1 %v837_v36  ;;  %v840_v41 = vmul.f32 %v792_v37, %v792_v37 }
 0x15b   : > { %v841_v40 = vmul.f32 %v793_v39, %v793_v39 }
 0x15d   : > { %1070 = vmatprep.mubr.f32.mxu1 %v841_v40 }
 0x15e   : > { %1071 = vmatmul.mubr.f32.gmra.mrb[62].mxu1 %v840_v41 }
 0x1e0   : > { %v1611_v42 = vpop.f32.mrb[32].mxu0 }
 0x1e1   : > { %v1142_v43 = vpop.f32.mrb[33].mxu0 }
 0x1e8   : > { %v1614_v44 = vpop.f32.mrb[34].mxu0 }
 0x1e9   : > { %v1152_v45 = vpop.f32.mrb[35].mxu0 }
 0x1f0   : > { %v1617_v47 = vpop.f32.mrb[36].mxu0 }
 0x1f1   : > { %v1162_v50 = vpop.f32.mrb[37].mxu0 }
 0x1f5   : > { %v1521_v46 = vpop.f32.mrb[32].mxu1 }
 0x1f6   : > { %v1522_v48 = vpop.f32.mrb[33].mxu1 }
 0x1f7   : > { %v1523_v51 = vadd.f32 %v1522_v48, %v1521_v46 }
 0x1f8   : > { %v1620_v60 = vpop.f32.mrb[38].mxu0 }
 0x1f9   : > { %v1143_v10 = vadd.f32 %v1523_v51, %v1142_v43  ;;  %v1524_v52 = vpop.f32.mrb[34].mxu1  ;;  %v1172_v62 = vpop.f32.mrb[39].mxu0 }
 0x1fa   : > { %v1525_v53 = vpop.f32.mrb[35].mxu1 }
 0x1fb   : > { %v1221_v54 = vmul.f32 -0.08680555, %v1143_v10  ;;  %v1526_v13 = vadd.f32 %v1525_v53, %v1524_v52 }
 0x1fd   : > { %v1237_v55 = vmul.f32 1.442695, %v1221_v54  ;;  %v1148_v56 = vadd.f32 %v1611_v42, %v1526_v13  ;;  %v1527_v57 = vpop.f32.mrb[36].mxu1 }
 0x1fe   : > { %v1528_v61 = vpop.f32.mrb[37].mxu1 }
 0x1ff   : > { %1786 = vpow2.f32 %v1237_v55  ;;  %v1222_v63 = vmul.f32 -0.08680555, %v1148_v56  ;;  %v1529_v0 = vadd.f32 %v1528_v61, %v1527_v57 }
 0x200   : > { %v1623_v11 = vpop.f32.mrb[40].mxu0 }
 0x201   : > { %v1239_v1 = vmul.f32 1.442695, %v1222_v63  ;;  %v1153_v2 = vadd.f32 %v1529_v0, %v1152_v45  ;;  %v1530_v3 = vpop.f32.mrb[38].mxu1  ;;  %v1182_v14 = vpop.f32.mrb[41].mxu0 }
 0x202   : > { %v1531_v4 = vpop.f32.mrb[39].mxu1 }
 0x203   : > { %1788 = vpow2.f32 %v1239_v1  ;;  %v1223_v5 = vmul.f32 -0.08680555, %v1153_v2  ;;  %v1532_v6 = vadd.f32 %v1531_v4, %v1530_v3 }
 0x205   : > { %v1241_v7 = vmul.f32 1.442695, %v1223_v5  ;;  %v1158_v8 = vadd.f32 %v1614_v44, %v1532_v6  ;;  %v1533_v9 = vpop.f32.mrb[40].mxu1 }
 0x206   : > { %v1534_v12 = vpop.f32.mrb[41].mxu1 }
 0x207   : > { %1790 = vpow2.f32 %v1241_v7  ;;  %v1224_v15 = vmul.f32 -0.08680555, %v1158_v8  ;;  %v1535_v17 = vadd.f32 %v1534_v12, %v1533_v9 }
 0x208   : > { %v1626_v25 = vpop.f32.mrb[42].mxu0 }
 0x209   : > { %v1787_v18 = vpop.eup %1786  ;;  %v1243_v20 = vmul.f32 1.442695, %v1224_v15  ;;  %v1163_v49 = vadd.f32 %v1535_v17, %v1162_v50  ;;  %v1536_v58 = vpop.f32.mrb[42].mxu1 }
 0x20a   : > { %1270 = vst.msk [vmem:[%s2503_s11] sm:$0xff] %vm1269_vm1, %v1787_v18  ;;  %v1537_v21 = vpop.f32.mrb[43].mxu1  ;;  %v1192_v27 = vpop.f32.mrb[43].mxu0 }
 0x20b   : > { %1792 = vpow2.f32 %v1243_v20  ;;  %v1225_v22 = vmul.f32 -0.08680555, %v1163_v49  ;;  %v1538_v59 = vadd.f32 %v1537_v21, %v1536_v58 }
 0x20d   : > { %v1789_v16 = vpop.eup %1788  ;;  %v1245_v19 = vmul.f32 1.442695, %v1225_v22  ;;  %v1168_v23 = vadd.f32 %v1617_v47, %v1538_v59  ;;  %v1539_v24 = vpop.f32.mrb[44].mxu1 }
 0x20e   : > { %1271 = vst.msk [vmem:[%s2503_s11 + $0x8] sm:$0xff] %vm1269_vm1, %v1789_v16  ;;  %v1540_v26 = vpop.f32.mrb[45].mxu1 }
 0x20f   : > { %1794 = vpow2.f32 %v1245_v19  ;;  %v1226_v28 = vmul.f32 -0.08680555, %v1168_v23  ;;  %v1541_v29 = vadd.f32 %v1540_v26, %v1539_v24 }
 0x210   : > { %v1629_v41 = vpop.f32.mrb[44].mxu0 }
 0x211   : > { %v1791_v30 = vpop.eup %1790  ;;  %v1247_v31 = vmul.f32 1.442695, %v1226_v28  ;;  %v1173_v32 = vadd.f32 %v1541_v29, %v1172_v62  ;;  %v1542_v33 = vpop.f32.mrb[46].mxu1 }
 0x212   : > { %1272 = vst.msk [vmem:[%s2503_s11 + $0x10] sm:$0xff] %vm1269_vm1, %v1791_v30  ;;  %v1543_v34 = vpop.f32.mrb[47].mxu1  ;;  %v1202_v43 = vpop.f32.mrb[45].mxu0 }
 0x213   : > { %1796 = vpow2.f32 %v1247_v31  ;;  %v1227_v35 = vmul.f32 -0.08680555, %v1173_v32  ;;  %v1544_v36 = vadd.f32 %v1543_v34, %v1542_v33 }
 0x215   : > { %v1793_v37 = vpop.eup %1792  ;;  %v1249_v38 = vmul.f32 1.442695, %v1227_v35  ;;  %v1178_v39 = vadd.f32 %v1620_v60, %v1544_v36  ;;  %v1545_v40 = vpop.f32.mrb[48].mxu1 }
 0x216   : > { %1273 = vst.msk [vmem:[%s2503_s11 + $0x18] sm:$0xff] %vm1269_vm1, %v1793_v37  ;;  %v1546_v42 = vpop.f32.mrb[49].mxu1 }
 0x217   : > { %1798 = vpow2.f32 %v1249_v38  ;;  %v1228_v44 = vmul.f32 -0.08680555, %v1178_v39  ;;  %v1547_v45 = vadd.f32 %v1546_v42, %v1545_v40 }
 0x218   : > { %v1632_v56 = vpop.f32.mrb[46].mxu0 }
 0x219   : > { %v1795_v46 = vpop.eup %1794  ;;  %v1251_v47 = vmul.f32 1.442695, %v1228_v44  ;;  %v1183_v48 = vadd.f32 %v1547_v45, %v1182_v14  ;;  %v1548_v50 = vpop.f32.mrb[50].mxu1 }
 0x21a   : > { %1274 = vst.msk [vmem:[%s2503_s11 + $0x20] sm:$0xff] %vm1269_vm1, %v1795_v46  ;;  %v1549_v51 = vpop.f32.mrb[51].mxu1  ;;  %v1212_v60 = vpop.f32.mrb[47].mxu0 }
 0x21b   : > { %1800 = vpow2.f32 %v1251_v47  ;;  %v1229_v10 = vmul.f32 -0.08680555, %v1183_v48  ;;  %v1550_v52 = vadd.f32 %v1549_v51, %v1548_v50 }
 0x21d   : > { %v1797_v53 = vpop.eup %1796  ;;  %v1253_v54 = vmul.f32 1.442695, %v1229_v10  ;;  %v1188_v13 = vadd.f32 %v1623_v11, %v1550_v52  ;;  %v1551_v55 = vpop.f32.mrb[52].mxu1 }
 0x21e   : > { %1275 = vst.msk [vmem:[%s2503_s11 + $0x28] sm:$0xff] %vm1269_vm1, %v1797_v53  ;;  %v1552_v57 = vpop.f32.mrb[53].mxu1 }
 0x21f   : > { %1802 = vpow2.f32 %v1253_v54  ;;  %v1230_v61 = vmul.f32 -0.08680555, %v1188_v13  ;;  %v1553_v62 = vadd.f32 %v1552_v57, %v1551_v55 }
 0x221   : > { %v1799_v63 = vpop.eup %1798  ;;  %v1255_v0 = vmul.f32 1.442695, %v1230_v61  ;;  %v1193_v1 = vadd.f32 %v1553_v62, %v1192_v27  ;;  %v1554_v2 = vpop.f32.mrb[54].mxu1 }
 0x222   : > { %1276 = vst.msk [vmem:[%s2503_s11 + $0x30] sm:$0xff] %vm1269_vm1, %v1799_v63  ;;  %v1555_v3 = vpop.f32.mrb[55].mxu1 }
 0x223   : > { %1804 = vpow2.f32 %v1255_v0  ;;  %v1231_v4 = vmul.f32 -0.08680555, %v1193_v1  ;;  %v1556_v5 = vadd.f32 %v1555_v3, %v1554_v2 }
 0x225   : > { %v1801_v6 = vpop.eup %1800  ;;  %v1257_v7 = vmul.f32 1.442695, %v1231_v4  ;;  %v1198_v8 = vadd.f32 %v1626_v25, %v1556_v5  ;;  %v1557_v9 = vpop.f32.mrb[56].mxu1 }
 0x226   : > { %1277 = vst.msk [vmem:[%s2503_s11 + $0x38] sm:$0xff] %vm1269_vm1, %v1801_v6  ;;  %v1558_v11 = vpop.f32.mrb[57].mxu1 }
 0x227   : > { %1806 = vpow2.f32 %v1257_v7  ;;  %v1232_v12 = vmul.f32 -0.08680555, %v1198_v8  ;;  %v1559_v14 = vadd.f32 %v1558_v11, %v1557_v9 }
 0x229   : > { %v1803_v15 = vpop.eup %1802  ;;  %v1259_v17 = vmul.f32 1.442695, %v1232_v12  ;;  %v1203_v18 = vadd.f32 %v1559_v14, %v1202_v43  ;;  %v1560_v20 = vpop.f32.mrb[58].mxu1 }
 0x22a   : > { %1278 = vst.msk [vmem:[%s2503_s11 + $0x40] sm:$0xff] %vm1269_vm1, %v1803_v15  ;;  %v1561_v49 = vpop.f32.mrb[59].mxu1 }
 0x22b   : > { %1808 = vpow2.f32 %v1259_v17  ;;  %v1233_v58 = vmul.f32 -0.08680555, %v1203_v18  ;;  %v1562_v21 = vadd.f32 %v1561_v49, %v1560_v20 }
 0x22d   : > { %v1805_v22 = vpop.eup %1804  ;;  %v1261_v59 = vmul.f32 1.442695, %v1233_v58  ;;  %v1208_v16 = vadd.f32 %v1629_v41, %v1562_v21  ;;  %v1563_v19 = vpop.f32.mrb[60].mxu1 }
 0x22e   : > { %1279 = vst.msk [vmem:[%s2503_s11 + $0x48] sm:$0xff] %vm1269_vm1, %v1805_v22  ;;  %v1564_v23 = vpop.f32.mrb[61].mxu1 }
 0x22f   : > { %1810 = vpow2.f32 %v1261_v59  ;;  %v1234_v24 = vmul.f32 -0.08680555, %v1208_v16  ;;  %v1565_v25 = vadd.f32 %v1564_v23, %v1563_v19 }
 0x231   : > { %v1807_v26 = vpop.eup %1806  ;;  %v1263_v27 = vmul.f32 1.442695, %v1234_v24  ;;  %v1213_v28 = vadd.f32 %v1565_v25, %v1212_v60  ;;  %v1566_v29 = vpop.f32.mrb[62].mxu1 }
 0x232   : > { %1280 = vst.msk [vmem:[%s2503_s11 + $0x50] sm:$0xff] %vm1269_vm1, %v1807_v26  ;;  %v1567_v30 = vpop.f32.mrb[63].mxu1 }
 0x233   : > { %1812 = vpow2.f32 %v1263_v27  ;;  %v1235_v31 = vmul.f32 -0.08680555, %v1213_v28  ;;  %v1568_v32 = vadd.f32 %v1567_v30, %v1566_v29 }
 0x235   : > { %v1809_v33 = vpop.eup %1808  ;;  %v1265_v34 = vmul.f32 1.442695, %v1235_v31  ;;  %v1218_v35 = vadd.f32 %v1632_v56, %v1568_v32 }
 0x236   : > { %1281 = vst.msk [vmem:[%s2503_s11 + $0x58] sm:$0xff] %vm1269_vm1, %v1809_v33 }
 0x237   : > { %1814 = vpow2.f32 %v1265_v34  ;;  %v1236_v36 = vmul.f32 -0.08680555, %v1218_v35 }
 0x239   : > { %v1811_v37 = vpop.eup %1810  ;;  %v1267_v38 = vmul.f32 1.442695, %v1236_v36 }
 0x23a   : > { %1282 = vst.msk [vmem:[%s2503_s11 + $0x60] sm:$0xff] %vm1269_vm1, %v1811_v37 }
 0x23b   : > { %1816 = vpow2.f32 %v1267_v38 }
 0x23d   : > { %v1813_v39 = vpop.eup %1812 }
 0x23e   : > { %1283 = vst.msk [vmem:[%s2503_s11 + $0x68] sm:$0xff] %vm1269_vm1, %v1813_v39 }
 0x241   : > { %v1815_v40 = vpop.eup %1814 }
 0x242   : > { %1284 = vst.msk [vmem:[%s2503_s11 + $0x70] sm:$0xff] %vm1269_vm1, %v1815_v40 }
 0x245   : > { %v1817_v41 = vpop.eup %1816 }
 0x246   : > { %1285 = vst.msk [vmem:[%s2503_s11 + $0x78] sm:$0xff] %vm1269_vm1, %v1817_v41 }
 0x247 PF: > { %s16_s18 = sadd.s32 1, %s1824_s18  }
 0x248   : > { %p13_p4 = scmp.ge.s32.totalorder %s16_s18, 4  }
 0x24a   :  { %15 = sbr.rel (!%p13_p4) target bundleno = 1 (0x1), region = 78 }

</bundles_post_ra>
